<compile_context>
chip_gen: v5e
topology: v5e:2x2
jax: 0.10.0
libtpu: 0.0.40
codegen_flags: <defaults>
</compile_context>

<pallas_src>
import math
from functools import partial

import jax
import jax.numpy as jnp
from jax.experimental import pallas as pl
from jax.experimental.pallas import tpu as pltpu

# ---------------- model dims (small, deterministic) ----------------
B = 2          # batch
S = 8          # source sequence length
N = 8          # number of target-tree nodes
D = 32         # hidden size
H = 4          # attention heads
DH = D // H    # per-head dim
G = B * H      # batch*heads leading dim for encoder MHA
FF = 64        # feed-forward hidden
V_SRC = 50     # source vocab
V_NODE = 30    # tree-node (target token) vocab
V_OUT = 128    # output vocab (lane-dense)
SRC_PAD_IDX = 0
EPS = 1e-5
NEG_INF = -1e9


# ---------------- in-kernel helpers ----------------
def _layernorm(x, g, b):
    mu = jnp.mean(x, axis=-1, keepdims=True)
    var = jnp.mean((x - mu) ** 2, axis=-1, keepdims=True)
    return (x - mu) * jax.lax.rsqrt(var + EPS) * g + b


def _softmax_last(s):
    s = s - jnp.max(s, axis=-1, keepdims=True)
    p = jnp.exp(s)
    return p * pl.reciprocal(jnp.sum(p, axis=-1, keepdims=True), approx=True)


# ---------------- fused kernel: embedder -> encoder -> GNN decoder ----------------
def fused_kernel(
        # data
        src_ref, tree_ref, mask_enc_ref, mask_dec_ref, adj_ref,
        # embedding tables
        tok_emb_ref, pos_emb_ref, node_emb_ref,
        # encoder MHA (per-(batch*head) weight layout; scales pre-folded)
        wq_ref, bq_ref, wk_ref, bk_ref, wv_ref, bv_ref, wo_ref, bo_ref,
        ln1_g_ref, ln1_b_ref,
        # encoder FFN
        w1_ref, bf1_ref, w2_ref, bf2_ref, ln2_g_ref, ln2_b_ref,
        # GNN decoder
        wg_ref, bg_ref, wqx_ref, wkx_ref, wvx_ref, wox_ref, box_ref,
        lnd_g_ref, lnd_b_ref, wout_ref, bout_ref,
        # output
        out_ref):
    f32 = jnp.float32

    # ---- embedder: one-hot @ table (gather-free) + positional embedding ----
    src_ids = src_ref[...]                                              # (B*S, 1) i32
    src_oh = jnp.where(
        jax.lax.broadcasted_iota(jnp.int32, (B * S, V_SRC), 1) == src_ids,
        1.0, 0.0).astype(f32)                                           # (B*S, V_SRC)
    x = jnp.dot(src_oh, tok_emb_ref[...], preferred_element_type=f32)   # (B*S, D)
    x3 = x.reshape(B, S, D) + pos_emb_ref[...][None, :, :]              # (B, S, D)
    x_flat = x3.reshape(B * S, D)

    # ---- encoder: multi-head self-attention, heads batched on leading axis ----
    xh = jnp.broadcast_to(x3[:, None], (B, H, S, D)).reshape(G, S, D)   # (G, S, D)
    q = jnp.einsum('gsd,gdk->gsk', xh, wq_ref[...],
                   preferred_element_type=f32) + bq_ref[...]            # (G, S, DH)
    k = jnp.einsum('gsd,gdk->gsk', xh, wk_ref[...],
                   preferred_element_type=f32) + bk_ref[...]
    v = jnp.einsum('gsd,gdk->gsk', xh, wv_ref[...],
                   preferred_element_type=f32) + bv_ref[...]
    s = jnp.einsum('gqd,gkd->gqk', q, k, preferred_element_type=f32)    # (G, S, S)
    s = s + mask_enc_ref[...]                                           # (+ (G,1,S))
    p = _softmax_last(s)
    ctx = jnp.einsum('gqk,gkd->gqd', p, v, preferred_element_type=f32)  # (G, S, DH)
    per_head = jnp.einsum('gqd,gde->gqe', ctx, wo_ref[...],
                          preferred_element_type=f32)                   # (G, S, D)
    attn = per_head.reshape(B, H, S, D).sum(axis=1).reshape(B * S, D) + bo_ref[...]

    x1 = _layernorm(x_flat + attn, ln1_g_ref[...], ln1_b_ref[...])
    ff = jnp.maximum(
        jnp.dot(x1, w1_ref[...], preferred_element_type=f32) + bf1_ref[...], 0.0)
    ff = jnp.dot(ff, w2_ref[...], preferred_element_type=f32) + bf2_ref[...]
    mem = _layernorm(x1 + ff, ln2_g_ref[...], ln2_b_ref[...])           # (B*S, D)

    # ---- GNN decoder ----
    tree_ids = tree_ref[...]                                            # (B*N, 1) i32
    node_oh = jnp.where(
        jax.lax.broadcasted_iota(jnp.int32, (B * N, V_NODE), 1) == tree_ids,
        1.0, 0.0).astype(f32)                                           # (B*N, V_NODE)
    nodes = jnp.dot(node_oh, node_emb_ref[...], preferred_element_type=f32)  # (B*N, D)

    # GCN layer:  h = relu( A_norm @ X @ Wg + bg )
    agg = jnp.einsum('bnm,bmd->bnd', adj_ref[...], nodes.reshape(B, N, D),
                     preferred_element_type=f32)                        # (B, N, D)
    h = jnp.maximum(
        jnp.dot(agg.reshape(B * N, D), wg_ref[...],
                preferred_element_type=f32) + bg_ref[...], 0.0)         # (B*N, D)

    # cross-attention (single head) from tree nodes into encoder memory
    qx = jnp.dot(h, wqx_ref[...], preferred_element_type=f32)           # (B*N, D)
    kx = jnp.dot(mem, wkx_ref[...], preferred_element_type=f32)         # (B*S, D)
    vx = jnp.dot(mem, wvx_ref[...], preferred_element_type=f32)         # (B*S, D)
    s2 = jnp.einsum('bnd,bsd->bns', qx.reshape(B, N, D), kx.reshape(B, S, D),
                    preferred_element_type=f32)                         # (B, N, S)
    s2 = s2 + mask_dec_ref[...]                                         # (+ (B,1,S))
    p2 = _softmax_last(s2)
    ctx2 = jnp.einsum('bns,bsd->bnd', p2, vx.reshape(B, S, D),
                      preferred_element_type=f32).reshape(B * N, D)

    comb = _layernorm(
        h + jnp.dot(ctx2, wox_ref[...], preferred_element_type=f32) + box_ref[...],
        lnd_g_ref[...], lnd_b_ref[...])
    logits = jnp.dot(comb, wout_ref[...], preferred_element_type=f32) + bout_ref[...]
    out_ref[...] = logits.reshape(B, N, V_OUT)


# ---------------- parameter init (logical / PyTorch-like layout) ----------------
def init_params(key):
    ks = iter(jax.random.split(key, 40))
    nrm = lambda shape: jax.random.normal(next(ks), shape, jnp.float32) * 0.02
    return {
        # embedder
        "tok_emb": nrm((V_SRC, D)),
        "pos_emb": nrm((S, D)),
        "node_emb": nrm((V_NODE, D)),
        # encoder layer
        "wq": nrm((D, D)), "bq": jnp.zeros((1, D), jnp.float32),
        "wk": nrm((D, D)), "bk": jnp.zeros((1, D), jnp.float32),
        "wv": nrm((D, D)), "bv": jnp.zeros((1, D), jnp.float32),
        "wo": nrm((D, D)), "bo": jnp.zeros((1, D), jnp.float32),
        "ln1_g": jnp.ones((1, D), jnp.float32), "ln1_b": jnp.zeros((1, D), jnp.float32),
        "w1": nrm((D, FF)), "bf1": jnp.zeros((1, FF), jnp.float32),
        "w2": nrm((FF, D)), "bf2": jnp.zeros((1, D), jnp.float32),
        "ln2_g": jnp.ones((1, D), jnp.float32), "ln2_b": jnp.zeros((1, D), jnp.float32),
        # gnn decoder
        "wg": nrm((D, D)), "bg": jnp.zeros((1, D), jnp.float32),
        "wq_x": nrm((D, D)), "wk_x": nrm((D, D)), "wv_x": nrm((D, D)),
        "wo_x": nrm((D, D)), "bo_x": jnp.zeros((1, D), jnp.float32),
        "lnd_g": jnp.ones((1, D), jnp.float32), "lnd_b": jnp.zeros((1, D), jnp.float32),
        "wout": nrm((D, V_OUT)), "bout": jnp.zeros((1, V_OUT), jnp.float32),
    }


# ---------------- one-time repack into kernel layout (scales folded) ----------------
def pack_params(p):
    def per_head_in(w):    # (D, D) -> (G, D, DH); head h = output cols h*DH:(h+1)*DH
        wh = w.reshape(D, H, DH).transpose(1, 0, 2)                # (H, D, DH)
        return jnp.broadcast_to(wh[None], (B, H, D, DH)).reshape(G, D, DH)

    def per_head_bias(b):  # (1, D) -> (G, 1, DH)
        bh = b.reshape(H, DH)[:, None, :]                          # (H, 1, DH)
        return jnp.broadcast_to(bh[None], (B, H, 1, DH)).reshape(G, 1, DH)

    def per_head_out(w):   # (D, D) -> (G, DH, D); head h = input rows h*DH:(h+1)*DH
        wh = w.reshape(H, DH, D)
        return jnp.broadcast_to(wh[None], (B, H, DH, D)).reshape(G, DH, D)

    qscale = 1.0 / math.sqrt(DH)
    return dict(
        tok_emb=p["tok_emb"] * math.sqrt(D),          # sqrt(D) folded into the table
        pos_emb=p["pos_emb"],
        node_emb=p["node_emb"],
        wq=per_head_in(p["wq"]) * qscale,             # 1/sqrt(DH) folded into q proj
        bq=per_head_bias(p["bq"]) * qscale,
        wk=per_head_in(p["wk"]), bk=per_head_bias(p["bk"]),
        wv=per_head_in(p["wv"]), bv=per_head_bias(p["bv"]),
        wo=per_head_out(p["wo"]), bo=p["bo"],
        ln1_g=p["ln1_g"], ln1_b=p["ln1_b"],
        w1=p["w1"], bf1=p["bf1"], w2=p["w2"], bf2=p["bf2"],
        ln2_g=p["ln2_g"], ln2_b=p["ln2_b"],
        wg=p["wg"], bg=p["bg"],
        wq_x=p["wq_x"] * (1.0 / math.sqrt(D)),        # cross-attn scale folded
        wk_x=p["wk_x"], wv_x=p["wv_x"], wo_x=p["wo_x"], bo_x=p["bo_x"],
        lnd_g=p["lnd_g"], lnd_b=p["lnd_b"],
        wout=p["wout"], bout=p["bout"],
    )


# ---------------- full forward (mirrors TransformerEncoderGnnDecoder.forward) ----------------
@partial(jax.jit, static_argnames=("epoch_num",))
def forward(kp, src, tree_ids, adj_norm, epoch_num=0):
    # TODO(synk): epoch_num drives the teacher-forcing schedule in the original
    # GNN decoder (training-time control flow); it does not affect this
    # deterministic forward pass.
    src_col = src.reshape(B * S, 1).astype(jnp.int32)
    tree_col = tree_ids.reshape(B * N, 1).astype(jnp.int32)

    m = jnp.where(src == SRC_PAD_IDX, NEG_INF, 0.0).astype(jnp.float32)   # (B, S)
    mask_dec = m[:, None, :]                                              # (B, 1, S)
    mask_enc = jnp.broadcast_to(m[:, None, None, :], (B, H, 1, S)).reshape(G, 1, S)

    inputs = (src_col, tree_col, mask_enc, mask_dec,
              adj_norm.astype(jnp.float32),
              kp["tok_emb"], kp["pos_emb"], kp["node_emb"],
              kp["wq"], kp["bq"], kp["wk"], kp["bk"], kp["wv"], kp["bv"],
              kp["wo"], kp["bo"], kp["ln1_g"], kp["ln1_b"],
              kp["w1"], kp["bf1"], kp["w2"], kp["bf2"], kp["ln2_g"], kp["ln2_b"],
              kp["wg"], kp["bg"], kp["wq_x"], kp["wk_x"], kp["wv_x"],
              kp["wo_x"], kp["bo_x"], kp["lnd_g"], kp["lnd_b"],
              kp["wout"], kp["bout"])

    vmem = pltpu.MemorySpace.VMEM
    return pl.pallas_call(
        fused_kernel,
        out_shape=jax.ShapeDtypeStruct((B, N, V_OUT), jnp.float32),
        in_specs=[pl.BlockSpec(memory_space=vmem) for _ in inputs],
        out_specs=pl.BlockSpec(memory_space=vmem),
    )(*inputs)


if __name__ == "__main__":
    key = jax.random.PRNGKey(0)
    kp_key, ks, kt = jax.random.split(key, 3)

    params = init_params(kp_key)
    kernel_params = pack_params(params)

    # source tokens, with padding (pad idx = 0) on the tail of each sequence
    src = jax.random.randint(ks, (B, S), 1, V_SRC, dtype=jnp.int32)
    src = src.at[:, -2:].set(SRC_PAD_IDX)

    # target trees: node token ids + a simple binary-tree adjacency (parent = (i-1)//2)
    tree_ids = jax.random.randint(kt, (B, N), 0, V_NODE, dtype=jnp.int32)
    A = jnp.zeros((N, N), jnp.float32)
    for i in range(1, N):
        parent = (i - 1) // 2
        A = A.at[i, parent].set(1.0).at[parent, i].set(1.0)
    A = A + jnp.eye(N, dtype=jnp.float32)
    A = A / jnp.sum(A, axis=-1, keepdims=True)          # row-normalized A + I
    adj_norm = jnp.broadcast_to(A, (B, N, N))

    out = forward(kernel_params, src, tree_ids, adj_norm, epoch_num=0)
    jax.block_until_ready(out)
    assert out.shape == (B, N, V_OUT) and out.dtype == jnp.float32
    assert bool(jnp.all(jnp.isfinite(out)))
    print("KERNEL_OK")
</pallas_src>

<mosaic_0001>
module attributes {stable_mosaic.version = 11 : i64} {
  func.func @fused_kernel(%arg0: memref<16x1xi32, #tpu.memory_space<vmem>>, %arg1: memref<16x1xi32, #tpu.memory_space<vmem>>, %arg2: memref<8x1x8xf32, #tpu.memory_space<vmem>>, %arg3: memref<2x1x8xf32, #tpu.memory_space<vmem>>, %arg4: memref<2x8x8xf32, #tpu.memory_space<vmem>>, %arg5: memref<50x32xf32, #tpu.memory_space<vmem>>, %arg6: memref<8x32xf32, #tpu.memory_space<vmem>>, %arg7: memref<30x32xf32, #tpu.memory_space<vmem>>, %arg8: memref<8x32x8xf32, #tpu.memory_space<vmem>>, %arg9: memref<8x1x8xf32, #tpu.memory_space<vmem>>, %arg10: memref<8x32x8xf32, #tpu.memory_space<vmem>>, %arg11: memref<8x1x8xf32, #tpu.memory_space<vmem>>, %arg12: memref<8x32x8xf32, #tpu.memory_space<vmem>>, %arg13: memref<8x1x8xf32, #tpu.memory_space<vmem>>, %arg14: memref<8x8x32xf32, #tpu.memory_space<vmem>>, %arg15: memref<1x32xf32, #tpu.memory_space<vmem>>, %arg16: memref<1x32xf32, #tpu.memory_space<vmem>>, %arg17: memref<1x32xf32, #tpu.memory_space<vmem>>, %arg18: memref<32x64xf32, #tpu.memory_space<vmem>>, %arg19: memref<1x64xf32, #tpu.memory_space<vmem>>, %arg20: memref<64x32xf32, #tpu.memory_space<vmem>>, %arg21: memref<1x32xf32, #tpu.memory_space<vmem>>, %arg22: memref<1x32xf32, #tpu.memory_space<vmem>>, %arg23: memref<1x32xf32, #tpu.memory_space<vmem>>, %arg24: memref<32x32xf32, #tpu.memory_space<vmem>>, %arg25: memref<1x32xf32, #tpu.memory_space<vmem>>, %arg26: memref<32x32xf32, #tpu.memory_space<vmem>>, %arg27: memref<32x32xf32, #tpu.memory_space<vmem>>, %arg28: memref<32x32xf32, #tpu.memory_space<vmem>>, %arg29: memref<32x32xf32, #tpu.memory_space<vmem>>, %arg30: memref<1x32xf32, #tpu.memory_space<vmem>>, %arg31: memref<1x32xf32, #tpu.memory_space<vmem>>, %arg32: memref<1x32xf32, #tpu.memory_space<vmem>>, %arg33: memref<32x128xf32, #tpu.memory_space<vmem>>, %arg34: memref<1x128xf32, #tpu.memory_space<vmem>>, %arg35: memref<2x8x128xf32, #tpu.memory_space<vmem>>) attributes {dimension_semantics = [], scalar_prefetch = 0 : i64, scratch_operands = 0 : i64, tpu.core_type = #tpu.core_type<tc>} {
    %c0 = arith.constant 0 : index
    %c0_0 = arith.constant 0 : index
    %0 = vector.load %arg0[%c0, %c0_0] : memref<16x1xi32, #tpu.memory_space<vmem>>, vector<16x1xi32>
    %1 = tpu.iota {dimensions = array<i32: 1>} : vector<16x50xi32>
    %2 = vector.broadcast %0 : vector<16x1xi32> to vector<16x50xi32>
    %3 = arith.cmpi eq, %1, %2 : vector<16x50xi32>
    %cst = arith.constant 1.000000e+00 : f32
    %cst_1 = arith.constant 0.000000e+00 : f32
    %4 = vector.broadcast %cst : f32 to vector<16x50xf32>
    %5 = vector.broadcast %cst_1 : f32 to vector<16x50xf32>
    %6 = arith.select %3, %4, %5 : vector<16x50xi1>, vector<16x50xf32>
    %c0_2 = arith.constant 0 : index
    %c0_3 = arith.constant 0 : index
    %7 = vector.load %arg5[%c0_2, %c0_3] : memref<50x32xf32, #tpu.memory_space<vmem>>, vector<50x32xf32>
    %cst_4 = arith.constant dense<0.000000e+00> : vector<16x32xf32>
    %8 = tpu.matmul %6, %7, %cst_4 {dimension_numbers = #tpu.dot_dimension_numbers<[1], [0], [0], [1], [0, 0, 1, 1], [], []>} : vector<16x50xf32>, vector<50x32xf32>, vector<16x32xf32> -> vector<16x32xf32>
    %9 = vector.shape_cast %8 : vector<16x32xf32> to vector<2x8x32xf32>
    %c0_5 = arith.constant 0 : index
    %c0_6 = arith.constant 0 : index
    %10 = vector.load %arg6[%c0_5, %c0_6] : memref<8x32xf32, #tpu.memory_space<vmem>>, vector<8x32xf32>
    %11 = vector.shape_cast %10 : vector<8x32xf32> to vector<1x8x32xf32>
    %12 = vector.broadcast %11 : vector<1x8x32xf32> to vector<2x8x32xf32>
    %13 = arith.addf %9, %12 : vector<2x8x32xf32>
    %14 = vector.shape_cast %13 : vector<2x8x32xf32> to vector<16x32xf32>
    %15 = vector.shape_cast %13 : vector<2x8x32xf32> to vector<2x1x8x32xf32>
    %16 = vector.shape_cast %15 : vector<2x1x8x32xf32> to vector<2x1x8x32xf32>
    %17 = vector.broadcast %16 : vector<2x1x8x32xf32> to vector<2x4x8x32xf32>
    %18 = vector.shape_cast %17 : vector<2x4x8x32xf32> to vector<8x8x32xf32>
    %c0_7 = arith.constant 0 : index
    %c0_8 = arith.constant 0 : index
    %c0_9 = arith.constant 0 : index
    %19 = vector.load %arg8[%c0_7, %c0_8, %c0_9] : memref<8x32x8xf32, #tpu.memory_space<vmem>>, vector<8x32x8xf32>
    "tpu.trace_start"() <{level = 10 : i32, message = "gsd,gdk->gsk"}> : () -> ()
    %cst_10 = arith.constant dense<0.000000e+00> : vector<8x8x8xf32>
    %20 = tpu.matmul %18, %19, %cst_10 {dimension_numbers = #tpu.dot_dimension_numbers<[2], [1], [1], [2], [0, 0, 0, 1, 1, 2], [0], [0]>} : vector<8x8x32xf32>, vector<8x32x8xf32>, vector<8x8x8xf32> -> vector<8x8x8xf32>
    "tpu.trace_stop"() : () -> ()
    %c0_11 = arith.constant 0 : index
    %c0_12 = arith.constant 0 : index
    %c0_13 = arith.constant 0 : index
    %21 = vector.load %arg9[%c0_11, %c0_12, %c0_13] : memref<8x1x8xf32, #tpu.memory_space<vmem>>, vector<8x1x8xf32>
    %22 = vector.broadcast %21 : vector<8x1x8xf32> to vector<8x8x8xf32>
    %23 = arith.addf %20, %22 : vector<8x8x8xf32>
    %c0_14 = arith.constant 0 : index
    %c0_15 = arith.constant 0 : index
    %c0_16 = arith.constant 0 : index
    %24 = vector.load %arg10[%c0_14, %c0_15, %c0_16] : memref<8x32x8xf32, #tpu.memory_space<vmem>>, vector<8x32x8xf32>
    "tpu.trace_start"() <{level = 10 : i32, message = "gsd,gdk->gsk"}> : () -> ()
    %cst_17 = arith.constant dense<0.000000e+00> : vector<8x8x8xf32>
    %25 = tpu.matmul %18, %24, %cst_17 {dimension_numbers = #tpu.dot_dimension_numbers<[2], [1], [1], [2], [0, 0, 0, 1, 1, 2], [0], [0]>} : vector<8x8x32xf32>, vector<8x32x8xf32>, vector<8x8x8xf32> -> vector<8x8x8xf32>
    "tpu.trace_stop"() : () -> ()
    %c0_18 = arith.constant 0 : index
    %c0_19 = arith.constant 0 : index
    %c0_20 = arith.constant 0 : index
    %26 = vector.load %arg11[%c0_18, %c0_19, %c0_20] : memref<8x1x8xf32, #tpu.memory_space<vmem>>, vector<8x1x8xf32>
    %27 = vector.broadcast %26 : vector<8x1x8xf32> to vector<8x8x8xf32>
    %28 = arith.addf %25, %27 : vector<8x8x8xf32>
    %c0_21 = arith.constant 0 : index
    %c0_22 = arith.constant 0 : index
    %c0_23 = arith.constant 0 : index
    %29 = vector.load %arg12[%c0_21, %c0_22, %c0_23] : memref<8x32x8xf32, #tpu.memory_space<vmem>>, vector<8x32x8xf32>
    "tpu.trace_start"() <{level = 10 : i32, message = "gsd,gdk->gsk"}> : () -> ()
    %cst_24 = arith.constant dense<0.000000e+00> : vector<8x8x8xf32>
    %30 = tpu.matmul %18, %29, %cst_24 {dimension_numbers = #tpu.dot_dimension_numbers<[2], [1], [1], [2], [0, 0, 0, 1, 1, 2], [0], [0]>} : vector<8x8x32xf32>, vector<8x32x8xf32>, vector<8x8x8xf32> -> vector<8x8x8xf32>
    "tpu.trace_stop"() : () -> ()
    %c0_25 = arith.constant 0 : index
    %c0_26 = arith.constant 0 : index
    %c0_27 = arith.constant 0 : index
    %31 = vector.load %arg13[%c0_25, %c0_26, %c0_27] : memref<8x1x8xf32, #tpu.memory_space<vmem>>, vector<8x1x8xf32>
    %32 = vector.broadcast %31 : vector<8x1x8xf32> to vector<8x8x8xf32>
    %33 = arith.addf %30, %32 : vector<8x8x8xf32>
    "tpu.trace_start"() <{level = 10 : i32, message = "gqd,gkd->gqk"}> : () -> ()
    %cst_28 = arith.constant dense<0.000000e+00> : vector<8x8x8xf32>
    %34 = tpu.matmul %23, %28, %cst_28 {dimension_numbers = #tpu.dot_dimension_numbers<[2], [2], [1], [1], [0, 0, 0, 1, 1, 1], [0], [0]>} : vector<8x8x8xf32>, vector<8x8x8xf32>, vector<8x8x8xf32> -> vector<8x8x8xf32>
    "tpu.trace_stop"() : () -> ()
    %c0_29 = arith.constant 0 : index
    %c0_30 = arith.constant 0 : index
    %c0_31 = arith.constant 0 : index
    %35 = vector.load %arg2[%c0_29, %c0_30, %c0_31] : memref<8x1x8xf32, #tpu.memory_space<vmem>>, vector<8x1x8xf32>
    %36 = vector.broadcast %35 : vector<8x1x8xf32> to vector<8x8x8xf32>
    %37 = arith.addf %34, %36 : vector<8x8x8xf32>
    %cst_32 = arith.constant dense<0xFF800000> : vector<8x8xf32>
    %38 = vector.multi_reduction <maximumf>, %37, %cst_32 [2] : vector<8x8x8xf32> to vector<8x8xf32>
    %39 = vector.shape_cast %38 : vector<8x8xf32> to vector<8x8x1xf32>
    %40 = vector.broadcast %39 : vector<8x8x1xf32> to vector<8x8x8xf32>
    %41 = arith.subf %37, %40 : vector<8x8x8xf32>
    %42 = math.exp %41 : vector<8x8x8xf32>
    %cst_33 = arith.constant dense<0.000000e+00> : vector<8x8xf32>
    %43 = vector.multi_reduction <add>, %42, %cst_33 [2] : vector<8x8x8xf32> to vector<8x8xf32>
    %44 = vector.shape_cast %43 : vector<8x8xf32> to vector<8x8x1xf32>
    %45 = tpu.reciprocal %44 {approx = true} : vector<8x8x1xf32> -> vector<8x8x1xf32>
    %46 = vector.broadcast %45 : vector<8x8x1xf32> to vector<8x8x8xf32>
    %47 = arith.mulf %42, %46 : vector<8x8x8xf32>
    "tpu.trace_start"() <{level = 10 : i32, message = "gqk,gkd->gqd"}> : () -> ()
    %cst_34 = arith.constant dense<0.000000e+00> : vector<8x8x8xf32>
    %48 = tpu.matmul %47, %33, %cst_34 {dimension_numbers = #tpu.dot_dimension_numbers<[2], [1], [1], [2], [0, 0, 0, 1, 1, 2], [0], [0]>} : vector<8x8x8xf32>, vector<8x8x8xf32>, vector<8x8x8xf32> -> vector<8x8x8xf32>
    "tpu.trace_stop"() : () -> ()
    %c0_35 = arith.constant 0 : index
    %c0_36 = arith.constant 0 : index
    %c0_37 = arith.constant 0 : index
    %49 = vector.load %arg14[%c0_35, %c0_36, %c0_37] : memref<8x8x32xf32, #tpu.memory_space<vmem>>, vector<8x8x32xf32>
    "tpu.trace_start"() <{level = 10 : i32, message = "gqd,gde->gqe"}> : () -> ()
    %cst_38 = arith.constant dense<0.000000e+00> : vector<8x8x32xf32>
    %50 = tpu.matmul %48, %49, %cst_38 {dimension_numbers = #tpu.dot_dimension_numbers<[2], [1], [1], [2], [0, 0, 0, 1, 1, 2], [0], [0]>} : vector<8x8x8xf32>, vector<8x8x32xf32>, vector<8x8x32xf32> -> vector<8x8x32xf32>
    "tpu.trace_stop"() : () -> ()
    %51 = vector.shape_cast %50 : vector<8x8x32xf32> to vector<2x4x8x32xf32>
    %cst_39 = arith.constant dense<0.000000e+00> : vector<2x8x32xf32>
    %52 = vector.multi_reduction <add>, %51, %cst_39 [1] : vector<2x4x8x32xf32> to vector<2x8x32xf32>
    %53 = vector.shape_cast %52 : vector<2x8x32xf32> to vector<16x32xf32>
    %c0_40 = arith.constant 0 : index
    %c0_41 = arith.constant 0 : index
    %54 = vector.load %arg15[%c0_40, %c0_41] : memref<1x32xf32, #tpu.memory_space<vmem>>, vector<1x32xf32>
    %55 = vector.broadcast %54 : vector<1x32xf32> to vector<16x32xf32>
    %56 = arith.addf %53, %55 : vector<16x32xf32>
    %57 = arith.addf %14, %56 : vector<16x32xf32>
    %c0_42 = arith.constant 0 : index
    %c0_43 = arith.constant 0 : index
    %58 = vector.load %arg16[%c0_42, %c0_43] : memref<1x32xf32, #tpu.memory_space<vmem>>, vector<1x32xf32>
    %c0_44 = arith.constant 0 : index
    %c0_45 = arith.constant 0 : index
    %59 = vector.load %arg17[%c0_44, %c0_45] : memref<1x32xf32, #tpu.memory_space<vmem>>, vector<1x32xf32>
    %cst_46 = arith.constant dense<0.000000e+00> : vector<16xf32>
    %60 = vector.multi_reduction <add>, %57, %cst_46 [1] : vector<16x32xf32> to vector<16xf32>
    %61 = vector.shape_cast %60 : vector<16xf32> to vector<16x1xf32>
    %cst_47 = arith.constant 3.200000e+01 : f32
    %62 = vector.broadcast %cst_47 : f32 to vector<16x1xf32>
    %63 = arith.divf %61, %62 : vector<16x1xf32>
    %64 = vector.broadcast %63 : vector<16x1xf32> to vector<16x32xf32>
    %65 = arith.subf %57, %64 : vector<16x32xf32>
    %66 = arith.mulf %65, %65 : vector<16x32xf32>
    %cst_48 = arith.constant dense<0.000000e+00> : vector<16xf32>
    %67 = vector.multi_reduction <add>, %66, %cst_48 [1] : vector<16x32xf32> to vector<16xf32>
    %68 = vector.shape_cast %67 : vector<16xf32> to vector<16x1xf32>
    %cst_49 = arith.constant 3.200000e+01 : f32
    %69 = vector.broadcast %cst_49 : f32 to vector<16x1xf32>
    %70 = arith.divf %68, %69 : vector<16x1xf32>
    %71 = vector.broadcast %63 : vector<16x1xf32> to vector<16x32xf32>
    %72 = arith.subf %57, %71 : vector<16x32xf32>
    %cst_50 = arith.constant 9.99999974E-6 : f32
    %73 = vector.broadcast %cst_50 : f32 to vector<16x1xf32>
    %74 = arith.addf %70, %73 : vector<16x1xf32>
    %75 = math.rsqrt %74 : vector<16x1xf32>
    %76 = vector.broadcast %75 : vector<16x1xf32> to vector<16x32xf32>
    %77 = arith.mulf %72, %76 : vector<16x32xf32>
    %78 = vector.broadcast %58 : vector<1x32xf32> to vector<16x32xf32>
    %79 = arith.mulf %77, %78 : vector<16x32xf32>
    %80 = vector.broadcast %59 : vector<1x32xf32> to vector<16x32xf32>
    %81 = arith.addf %79, %80 : vector<16x32xf32>
    %c0_51 = arith.constant 0 : index
    %c0_52 = arith.constant 0 : index
    %82 = vector.load %arg18[%c0_51, %c0_52] : memref<32x64xf32, #tpu.memory_space<vmem>>, vector<32x64xf32>
    %cst_53 = arith.constant dense<0.000000e+00> : vector<16x64xf32>
    %83 = tpu.matmul %81, %82, %cst_53 {dimension_numbers = #tpu.dot_dimension_numbers<[1], [0], [0], [1], [0, 0, 1, 1], [], []>} : vector<16x32xf32>, vector<32x64xf32>, vector<16x64xf32> -> vector<16x64xf32>
    %c0_54 = arith.constant 0 : index
    %c0_55 = arith.constant 0 : index
    %84 = vector.load %arg19[%c0_54, %c0_55] : memref<1x64xf32, #tpu.memory_space<vmem>>, vector<1x64xf32>
    %85 = vector.broadcast %84 : vector<1x64xf32> to vector<16x64xf32>
    %86 = arith.addf %83, %85 : vector<16x64xf32>
    %cst_56 = arith.constant 0.000000e+00 : f32
    %87 = vector.broadcast %cst_56 : f32 to vector<16x64xf32>
    %88 = arith.maximumf %86, %87 : vector<16x64xf32>
    %c0_57 = arith.constant 0 : index
    %c0_58 = arith.constant 0 : index
    %89 = vector.load %arg20[%c0_57, %c0_58] : memref<64x32xf32, #tpu.memory_space<vmem>>, vector<64x32xf32>
    %cst_59 = arith.constant dense<0.000000e+00> : vector<16x32xf32>
    %90 = tpu.matmul %88, %89, %cst_59 {dimension_numbers = #tpu.dot_dimension_numbers<[1], [0], [0], [1], [0, 0, 1, 1], [], []>} : vector<16x64xf32>, vector<64x32xf32>, vector<16x32xf32> -> vector<16x32xf32>
    %c0_60 = arith.constant 0 : index
    %c0_61 = arith.constant 0 : index
    %91 = vector.load %arg21[%c0_60, %c0_61] : memref<1x32xf32, #tpu.memory_space<vmem>>, vector<1x32xf32>
    %92 = vector.broadcast %91 : vector<1x32xf32> to vector<16x32xf32>
    %93 = arith.addf %90, %92 : vector<16x32xf32>
    %94 = arith.addf %81, %93 : vector<16x32xf32>
    %c0_62 = arith.constant 0 : index
    %c0_63 = arith.constant 0 : index
    %95 = vector.load %arg22[%c0_62, %c0_63] : memref<1x32xf32, #tpu.memory_space<vmem>>, vector<1x32xf32>
    %c0_64 = arith.constant 0 : index
    %c0_65 = arith.constant 0 : index
    %96 = vector.load %arg23[%c0_64, %c0_65] : memref<1x32xf32, #tpu.memory_space<vmem>>, vector<1x32xf32>
    %cst_66 = arith.constant dense<0.000000e+00> : vector<16xf32>
    %97 = vector.multi_reduction <add>, %94, %cst_66 [1] : vector<16x32xf32> to vector<16xf32>
    %98 = vector.shape_cast %97 : vector<16xf32> to vector<16x1xf32>
    %cst_67 = arith.constant 3.200000e+01 : f32
    %99 = vector.broadcast %cst_67 : f32 to vector<16x1xf32>
    %100 = arith.divf %98, %99 : vector<16x1xf32>
    %101 = vector.broadcast %100 : vector<16x1xf32> to vector<16x32xf32>
    %102 = arith.subf %94, %101 : vector<16x32xf32>
    %103 = arith.mulf %102, %102 : vector<16x32xf32>
    %cst_68 = arith.constant dense<0.000000e+00> : vector<16xf32>
    %104 = vector.multi_reduction <add>, %103, %cst_68 [1] : vector<16x32xf32> to vector<16xf32>
    %105 = vector.shape_cast %104 : vector<16xf32> to vector<16x1xf32>
    %cst_69 = arith.constant 3.200000e+01 : f32
    %106 = vector.broadcast %cst_69 : f32 to vector<16x1xf32>
    %107 = arith.divf %105, %106 : vector<16x1xf32>
    %108 = vector.broadcast %100 : vector<16x1xf32> to vector<16x32xf32>
    %109 = arith.subf %94, %108 : vector<16x32xf32>
    %cst_70 = arith.constant 9.99999974E-6 : f32
    %110 = vector.broadcast %cst_70 : f32 to vector<16x1xf32>
    %111 = arith.addf %107, %110 : vector<16x1xf32>
    %112 = math.rsqrt %111 : vector<16x1xf32>
    %113 = vector.broadcast %112 : vector<16x1xf32> to vector<16x32xf32>
    %114 = arith.mulf %109, %113 : vector<16x32xf32>
    %115 = vector.broadcast %95 : vector<1x32xf32> to vector<16x32xf32>
    %116 = arith.mulf %114, %115 : vector<16x32xf32>
    %117 = vector.broadcast %96 : vector<1x32xf32> to vector<16x32xf32>
    %118 = arith.addf %116, %117 : vector<16x32xf32>
    %c0_71 = arith.constant 0 : index
    %c0_72 = arith.constant 0 : index
    %119 = vector.load %arg1[%c0_71, %c0_72] : memref<16x1xi32, #tpu.memory_space<vmem>>, vector<16x1xi32>
    %120 = tpu.iota {dimensions = array<i32: 1>} : vector<16x30xi32>
    %121 = vector.broadcast %119 : vector<16x1xi32> to vector<16x30xi32>
    %122 = arith.cmpi eq, %120, %121 : vector<16x30xi32>
    %cst_73 = arith.constant 1.000000e+00 : f32
    %cst_74 = arith.constant 0.000000e+00 : f32
    %123 = vector.broadcast %cst_73 : f32 to vector<16x30xf32>
    %124 = vector.broadcast %cst_74 : f32 to vector<16x30xf32>
    %125 = arith.select %122, %123, %124 : vector<16x30xi1>, vector<16x30xf32>
    %c0_75 = arith.constant 0 : index
    %c0_76 = arith.constant 0 : index
    %126 = vector.load %arg7[%c0_75, %c0_76] : memref<30x32xf32, #tpu.memory_space<vmem>>, vector<30x32xf32>
    %cst_77 = arith.constant dense<0.000000e+00> : vector<16x32xf32>
    %127 = tpu.matmul %125, %126, %cst_77 {dimension_numbers = #tpu.dot_dimension_numbers<[1], [0], [0], [1], [0, 0, 1, 1], [], []>} : vector<16x30xf32>, vector<30x32xf32>, vector<16x32xf32> -> vector<16x32xf32>
    %c0_78 = arith.constant 0 : index
    %c0_79 = arith.constant 0 : index
    %c0_80 = arith.constant 0 : index
    %128 = vector.load %arg4[%c0_78, %c0_79, %c0_80] : memref<2x8x8xf32, #tpu.memory_space<vmem>>, vector<2x8x8xf32>
    %129 = vector.shape_cast %127 : vector<16x32xf32> to vector<2x8x32xf32>
    "tpu.trace_start"() <{level = 10 : i32, message = "bnm,bmd->bnd"}> : () -> ()
    %cst_81 = arith.constant dense<0.000000e+00> : vector<2x8x32xf32>
    %130 = tpu.matmul %128, %129, %cst_81 {dimension_numbers = #tpu.dot_dimension_numbers<[2], [1], [1], [2], [0, 0, 0, 1, 1, 2], [0], [0]>} : vector<2x8x8xf32>, vector<2x8x32xf32>, vector<2x8x32xf32> -> vector<2x8x32xf32>
    "tpu.trace_stop"() : () -> ()
    %131 = vector.shape_cast %130 : vector<2x8x32xf32> to vector<16x32xf32>
    %c0_82 = arith.constant 0 : index
    %c0_83 = arith.constant 0 : index
    %132 = vector.load %arg24[%c0_82, %c0_83] : memref<32x32xf32, #tpu.memory_space<vmem>>, vector<32x32xf32>
    %cst_84 = arith.constant dense<0.000000e+00> : vector<16x32xf32>
    %133 = tpu.matmul %131, %132, %cst_84 {dimension_numbers = #tpu.dot_dimension_numbers<[1], [0], [0], [1], [0, 0, 1, 1], [], []>} : vector<16x32xf32>, vector<32x32xf32>, vector<16x32xf32> -> vector<16x32xf32>
    %c0_85 = arith.constant 0 : index
    %c0_86 = arith.constant 0 : index
    %134 = vector.load %arg25[%c0_85, %c0_86] : memref<1x32xf32, #tpu.memory_space<vmem>>, vector<1x32xf32>
    %135 = vector.broadcast %134 : vector<1x32xf32> to vector<16x32xf32>
    %136 = arith.addf %133, %135 : vector<16x32xf32>
    %cst_87 = arith.constant 0.000000e+00 : f32
    %137 = vector.broadcast %cst_87 : f32 to vector<16x32xf32>
    %138 = arith.maximumf %136, %137 : vector<16x32xf32>
    %c0_88 = arith.constant 0 : index
    %c0_89 = arith.constant 0 : index
    %139 = vector.load %arg26[%c0_88, %c0_89] : memref<32x32xf32, #tpu.memory_space<vmem>>, vector<32x32xf32>
    %cst_90 = arith.constant dense<0.000000e+00> : vector<16x32xf32>
    %140 = tpu.matmul %138, %139, %cst_90 {dimension_numbers = #tpu.dot_dimension_numbers<[1], [0], [0], [1], [0, 0, 1, 1], [], []>} : vector<16x32xf32>, vector<32x32xf32>, vector<16x32xf32> -> vector<16x32xf32>
    %c0_91 = arith.constant 0 : index
    %c0_92 = arith.constant 0 : index
    %141 = vector.load %arg27[%c0_91, %c0_92] : memref<32x32xf32, #tpu.memory_space<vmem>>, vector<32x32xf32>
    %cst_93 = arith.constant dense<0.000000e+00> : vector<16x32xf32>
    %142 = tpu.matmul %118, %141, %cst_93 {dimension_numbers = #tpu.dot_dimension_numbers<[1], [0], [0], [1], [0, 0, 1, 1], [], []>} : vector<16x32xf32>, vector<32x32xf32>, vector<16x32xf32> -> vector<16x32xf32>
    %c0_94 = arith.constant 0 : index
    %c0_95 = arith.constant 0 : index
    %143 = vector.load %arg28[%c0_94, %c0_95] : memref<32x32xf32, #tpu.memory_space<vmem>>, vector<32x32xf32>
    %cst_96 = arith.constant dense<0.000000e+00> : vector<16x32xf32>
    %144 = tpu.matmul %118, %143, %cst_96 {dimension_numbers = #tpu.dot_dimension_numbers<[1], [0], [0], [1], [0, 0, 1, 1], [], []>} : vector<16x32xf32>, vector<32x32xf32>, vector<16x32xf32> -> vector<16x32xf32>
    %145 = vector.shape_cast %140 : vector<16x32xf32> to vector<2x8x32xf32>
    %146 = vector.shape_cast %142 : vector<16x32xf32> to vector<2x8x32xf32>
    "tpu.trace_start"() <{level = 10 : i32, message = "bnd,bsd->bns"}> : () -> ()
    %cst_97 = arith.constant dense<0.000000e+00> : vector<2x8x8xf32>
    %147 = tpu.matmul %145, %146, %cst_97 {dimension_numbers = #tpu.dot_dimension_numbers<[2], [2], [1], [1], [0, 0, 0, 1, 1, 1], [0], [0]>} : vector<2x8x32xf32>, vector<2x8x32xf32>, vector<2x8x8xf32> -> vector<2x8x8xf32>
    "tpu.trace_stop"() : () -> ()
    %c0_98 = arith.constant 0 : index
    %c0_99 = arith.constant 0 : index
    %c0_100 = arith.constant 0 : index
    %148 = vector.load %arg3[%c0_98, %c0_99, %c0_100] : memref<2x1x8xf32, #tpu.memory_space<vmem>>, vector<2x1x8xf32>
    %149 = vector.broadcast %148 : vector<2x1x8xf32> to vector<2x8x8xf32>
    %150 = arith.addf %147, %149 : vector<2x8x8xf32>
    %cst_101 = arith.constant dense<0xFF800000> : vector<2x8xf32>
    %151 = vector.multi_reduction <maximumf>, %150, %cst_101 [2] : vector<2x8x8xf32> to vector<2x8xf32>
    %152 = vector.shape_cast %151 : vector<2x8xf32> to vector<2x8x1xf32>
    %153 = vector.broadcast %152 : vector<2x8x1xf32> to vector<2x8x8xf32>
    %154 = arith.subf %150, %153 : vector<2x8x8xf32>
    %155 = math.exp %154 : vector<2x8x8xf32>
    %cst_102 = arith.constant dense<0.000000e+00> : vector<2x8xf32>
    %156 = vector.multi_reduction <add>, %155, %cst_102 [2] : vector<2x8x8xf32> to vector<2x8xf32>
    %157 = vector.shape_cast %156 : vector<2x8xf32> to vector<2x8x1xf32>
    %158 = tpu.reciprocal %157 {approx = true} : vector<2x8x1xf32> -> vector<2x8x1xf32>
    %159 = vector.broadcast %158 : vector<2x8x1xf32> to vector<2x8x8xf32>
    %160 = arith.mulf %155, %159 : vector<2x8x8xf32>
    %161 = vector.shape_cast %144 : vector<16x32xf32> to vector<2x8x32xf32>
    "tpu.trace_start"() <{level = 10 : i32, message = "bns,bsd->bnd"}> : () -> ()
    %cst_103 = arith.constant dense<0.000000e+00> : vector<2x8x32xf32>
    %162 = tpu.matmul %160, %161, %cst_103 {dimension_numbers = #tpu.dot_dimension_numbers<[2], [1], [1], [2], [0, 0, 0, 1, 1, 2], [0], [0]>} : vector<2x8x8xf32>, vector<2x8x32xf32>, vector<2x8x32xf32> -> vector<2x8x32xf32>
    "tpu.trace_stop"() : () -> ()
    %163 = vector.shape_cast %162 : vector<2x8x32xf32> to vector<16x32xf32>
    %c0_104 = arith.constant 0 : index
    %c0_105 = arith.constant 0 : index
    %164 = vector.load %arg29[%c0_104, %c0_105] : memref<32x32xf32, #tpu.memory_space<vmem>>, vector<32x32xf32>
    %cst_106 = arith.constant dense<0.000000e+00> : vector<16x32xf32>
    %165 = tpu.matmul %163, %164, %cst_106 {dimension_numbers = #tpu.dot_dimension_numbers<[1], [0], [0], [1], [0, 0, 1, 1], [], []>} : vector<16x32xf32>, vector<32x32xf32>, vector<16x32xf32> -> vector<16x32xf32>
    %166 = arith.addf %138, %165 : vector<16x32xf32>
    %c0_107 = arith.constant 0 : index
    %c0_108 = arith.constant 0 : index
    %167 = vector.load %arg30[%c0_107, %c0_108] : memref<1x32xf32, #tpu.memory_space<vmem>>, vector<1x32xf32>
    %168 = vector.broadcast %167 : vector<1x32xf32> to vector<16x32xf32>
    %169 = arith.addf %166, %168 : vector<16x32xf32>
    %c0_109 = arith.constant 0 : index
    %c0_110 = arith.constant 0 : index
    %170 = vector.load %arg31[%c0_109, %c0_110] : memref<1x32xf32, #tpu.memory_space<vmem>>, vector<1x32xf32>
    %c0_111 = arith.constant 0 : index
    %c0_112 = arith.constant 0 : index
    %171 = vector.load %arg32[%c0_111, %c0_112] : memref<1x32xf32, #tpu.memory_space<vmem>>, vector<1x32xf32>
    %cst_113 = arith.constant dense<0.000000e+00> : vector<16xf32>
    %172 = vector.multi_reduction <add>, %169, %cst_113 [1] : vector<16x32xf32> to vector<16xf32>
    %173 = vector.shape_cast %172 : vector<16xf32> to vector<16x1xf32>
    %cst_114 = arith.constant 3.200000e+01 : f32
    %174 = vector.broadcast %cst_114 : f32 to vector<16x1xf32>
    %175 = arith.divf %173, %174 : vector<16x1xf32>
    %176 = vector.broadcast %175 : vector<16x1xf32> to vector<16x32xf32>
    %177 = arith.subf %169, %176 : vector<16x32xf32>
    %178 = arith.mulf %177, %177 : vector<16x32xf32>
    %cst_115 = arith.constant dense<0.000000e+00> : vector<16xf32>
    %179 = vector.multi_reduction <add>, %178, %cst_115 [1] : vector<16x32xf32> to vector<16xf32>
    %180 = vector.shape_cast %179 : vector<16xf32> to vector<16x1xf32>
    %cst_116 = arith.constant 3.200000e+01 : f32
    %181 = vector.broadcast %cst_116 : f32 to vector<16x1xf32>
    %182 = arith.divf %180, %181 : vector<16x1xf32>
    %183 = vector.broadcast %175 : vector<16x1xf32> to vector<16x32xf32>
    %184 = arith.subf %169, %183 : vector<16x32xf32>
    %cst_117 = arith.constant 9.99999974E-6 : f32
    %185 = vector.broadcast %cst_117 : f32 to vector<16x1xf32>
    %186 = arith.addf %182, %185 : vector<16x1xf32>
    %187 = math.rsqrt %186 : vector<16x1xf32>
    %188 = vector.broadcast %187 : vector<16x1xf32> to vector<16x32xf32>
    %189 = arith.mulf %184, %188 : vector<16x32xf32>
    %190 = vector.broadcast %170 : vector<1x32xf32> to vector<16x32xf32>
    %191 = arith.mulf %189, %190 : vector<16x32xf32>
    %192 = vector.broadcast %171 : vector<1x32xf32> to vector<16x32xf32>
    %193 = arith.addf %191, %192 : vector<16x32xf32>
    %c0_118 = arith.constant 0 : index
    %c0_119 = arith.constant 0 : index
    %194 = vector.load %arg33[%c0_118, %c0_119] : memref<32x128xf32, #tpu.memory_space<vmem>>, vector<32x128xf32>
    %cst_120 = arith.constant dense<0.000000e+00> : vector<16x128xf32>
    %195 = tpu.matmul %193, %194, %cst_120 {dimension_numbers = #tpu.dot_dimension_numbers<[1], [0], [0], [1], [0, 0, 1, 1], [], []>} : vector<16x32xf32>, vector<32x128xf32>, vector<16x128xf32> -> vector<16x128xf32>
    %c0_121 = arith.constant 0 : index
    %c0_122 = arith.constant 0 : index
    %196 = vector.load %arg34[%c0_121, %c0_122] : memref<1x128xf32, #tpu.memory_space<vmem>>, vector<1x128xf32>
    %197 = vector.broadcast %196 : vector<1x128xf32> to vector<16x128xf32>
    %198 = arith.addf %195, %197 : vector<16x128xf32>
    %199 = vector.shape_cast %198 : vector<16x128xf32> to vector<2x8x128xf32>
    %c0_123 = arith.constant 0 : index
    %c0_124 = arith.constant 0 : index
    %c0_125 = arith.constant 0 : index
    %200 = vector.load %arg35[%c0_123, %c0_124, %c0_125] : memref<2x8x128xf32, #tpu.memory_space<vmem>>, vector<2x8x128xf32>
    tpu.vector_store %arg35[%c0_123, %c0_124, %c0_125], %199 {strides = array<i32>} : memref<2x8x128xf32, #tpu.memory_space<vmem>>, vector<2x8x128xf32>,
    return
  }
}

</mosaic_0001>

<bundles_post_ra>
// kernel: forward.1
= control target key start
LH: loop header
LB: loop body
LE: loop exit
PB: predicated region body
PF: predicated region fallthrough
CT: control target
= control target key end

     0   :  { %s2615_s6 = smov 1   ;;  %s2616_s10 = smov 2   ;;  %s3254_s0 = inlined_call_operand.smem [shape: u32[36], index: -1, kind: input, shape index: {}] }
   0x1   :  { %s2664_s5 = sld [smem:[%s3254_s0]]   ;;  %s2617_s14 = smov 3  }
   0x2   :  { %s2669_s9 = sld [smem:[%s3254_s0 + %s2615_s6]]   ;;  %s2618_s18 = smov 4  }
   0x3   :  { %s2674_s13 = sld [smem:[%s3254_s0 + %s2616_s10]]   ;;  %s2619_s22 = smov 5  }
   0x4   :  { %s2679_s17 = sld [smem:[%s3254_s0 + %s2617_s14]]   ;;  %s2620_s26 = smov 6  }
   0x5   :  { %s2684_s21 = sld [smem:[%s3254_s0 + %s2618_s18]]   ;;  %s2621_s30 = smov 7  }
   0x6   :  { %s2689_s25 = sld [smem:[%s3254_s0 + %s2619_s22]]   ;;  %s2622_s4 = smov 8  }
   0x7   :  { %s2694_s29 = sld [smem:[%s3254_s0 + %s2620_s26]]   ;;  %s2623_s10 = smov 9  }
   0x8   :  { %s2699_s3 = sld [smem:[%s3254_s0 + %s2621_s30]]   ;;  %s2624_s15 = smov 10  }
   0x9   :  { %s2704_s8 = sld [smem:[%s3254_s0 + %s2622_s4]]   ;;  %s2625_s20 = smov 11  }
   0xa   :  { %3264 = sst [smem:[#allocation5_spill]] %s2679_s17  ;;  %s2626_s26 = smov 12  }
   0xb   :  { %3265 = sst [smem:[#allocation6_spill]] %s2684_s21  ;;  %s2627_s1 = smov 13  }
   0xc   :  { %s2709_s14 = sld [smem:[%s3254_s0 + %s2623_s10]]   ;;  %s2628_s7 = smov 14  }
   0xd   :  { %s2714_s19 = sld [smem:[%s3254_s0 + %s2624_s15]]   ;;  %s2629_s15 = smov 15  }
   0xe   :  { %s2719_s24 = sld [smem:[%s3254_s0 + %s2625_s20]]   ;;  %s2630_s22 = smov 16  }
   0xf   :  { %s2724_s30 = sld [smem:[%s3254_s0 + %s2626_s26]]   ;;  %s2631_s28 = smov 17  }
  0x10   :  { %s2729_s6 = sld [smem:[%s3254_s0 + %s2627_s1]]  }
  0x11   :  { %s2734_s12 = sld [smem:[%s3254_s0 + %s2628_s7]]   ;;  %s2632_s7 = smov 18  }
  0x12   :  { %s2739_s20 = sld [smem:[%s3254_s0 + %s2629_s15]]   ;;  %s2633_s15 = smov 19  }
  0x13   :  { %s2744_s27 = sld [smem:[%s3254_s0 + %s2630_s22]]   ;;  %s2634_s22 = smov 20  }
  0x14   :  { %s2749_s4 = sld [smem:[%s3254_s0 + %s2631_s28]]   ;;  %s2635_s28 = smov 21  }
  0x15   :  { %s2754_s17 = sld [smem:[%s3254_s0 + %s2632_s7]]   ;;  %s2636_s7 = smov 22  }
  0x16   :  { %s2759_s21 = sld [smem:[%s3254_s0 + %s2633_s15]]   ;;  %s2637_s15 = smov 23  }
  0x19   :  { %3266 = sst [smem:[#allocation7_spill]] %s2744_s27 }
  0x1a   :  { %3267 = sst [smem:[#allocation8_spill]] %s2749_s4 }
  0x1b   :  { %3268 = sst [smem:[#allocation9_spill]] %s2754_s17 }
  0x1c   :  { %3269 = sst [smem:[#allocation10_spill]] %s2759_s21 }
  0x1d   :  { %s2764_s27 = sld [smem:[%s3254_s0 + %s2634_s22]]   ;;  %s2638_s22 = smov 24  }
  0x1e   :  { %s2769_s4 = sld [smem:[%s3254_s0 + %s2635_s28]]   ;;  %s2639_s28 = smov 25  }
  0x1f   :  { %s2774_s17 = sld [smem:[%s3254_s0 + %s2636_s7]]   ;;  %s2640_s7 = smov 26  }
  0x20   :  { %s2779_s21 = sld [smem:[%s3254_s0 + %s2637_s15]]   ;;  %s2641_s15 = smov 27  }
  0x23   :  { %3270 = sst [smem:[#allocation11_spill]] %s2764_s27 }
  0x24   :  { %3271 = sst [smem:[#allocation12_spill]] %s2769_s4 }
  0x25   :  { %3272 = sst [smem:[#allocation13_spill]] %s2774_s17 }
  0x26   :  { %3273 = sst [smem:[#allocation14_spill]] %s2779_s21 }
  0x27   :  { %s2784_s27 = sld [smem:[%s3254_s0 + %s2638_s22]]   ;;  %s2642_s22 = smov 28  }
  0x28   :  { %s2789_s4 = sld [smem:[%s3254_s0 + %s2639_s28]]   ;;  %s2643_s28 = smov 29  }
  0x29   :  { %s2794_s17 = sld [smem:[%s3254_s0 + %s2640_s7]]   ;;  %s2644_s7 = smov 30  }
  0x2a   :  { %s2799_s21 = sld [smem:[%s3254_s0 + %s2641_s15]]   ;;  %s2645_s15 = smov 31  }
  0x2d   :  { %3274 = sst [smem:[#allocation15_spill]] %s2784_s27 }
  0x2e   :  { %3275 = sst [smem:[#allocation16_spill]] %s2789_s4 }
  0x2f   :  { %3276 = sst [smem:[#allocation17_spill]] %s2794_s17 }
  0x30   :  { %3277 = sst [smem:[#allocation18_spill]] %s2799_s21 }
  0x31   :  { %s2804_s27 = sld [smem:[%s3254_s0 + %s2642_s22]]   ;;  %s2646_s22 = smov 32  }
  0x32   :  { %s2809_s4 = sld [smem:[%s3254_s0 + %s2643_s28]]   ;;  %s2647_s28 = smov 33  }
  0x33   :  { %s2814_s17 = sld [smem:[%s3254_s0 + %s2644_s7]]   ;;  %s2648_s7 = smov 34  }
  0x34   :  { %s2819_s21 = sld [smem:[%s3254_s0 + %s2645_s15]]   ;;  %s2649_s15 = smov 35  }
  0x37   :  { %3278 = sst [smem:[#allocation19_spill]] %s2804_s27 }
  0x38   :  { %3279 = sst [smem:[#allocation20_spill]] %s2809_s4 }
  0x39   :  { %3280 = sst [smem:[#allocation21_spill]] %s2814_s17 }
  0x3a   :  { %3281 = sst [smem:[#allocation22_spill]] %s2819_s21 }
  0x3b   :  { %s2824_s27 = sld [smem:[%s3254_s0 + %s2646_s22]]  }
  0x3c   :  { %s2829_s4 = sld [smem:[%s3254_s0 + %s2647_s28]]  }
  0x3d   :  { %s2834_s17 = sld [smem:[%s3254_s0 + %s2648_s7]]  }
  0x3e   :  { %s2839_s21 = sld [smem:[%s3254_s0 + %s2649_s15]]  }
  0x3f   :  { %v147_v0 = vld [vmem:[%s2664_s5] sm:$0xff]  ;;  %v167_v1 = vld [vmem:[%s2689_s25 + $0x30] sm:$0x3]  ;;  %vm175_vm0 = vcmask 1041408   ;;  %v2650_v2 = vmov 0   ;;  %v166_v3 = vld [vmem:[%s2689_s25 + $0x28] sm:$0xff] }
  0x40   :  { %2487 = vset.pattern.permute.xlu0 %v2650_v2  ;;  %2360 = vmatpush.msk.msra.mxu0 %vm175_vm0, %v167_v1  ;;  %v165_v4 = vld [vmem:[%s2689_s25 + $0x20] sm:$0xff]  ;;  %v164_v5 = vld [vmem:[%s2689_s25 + $0x18] sm:$0xff]  ;;  %v163_v6 = vld [vmem:[%s2689_s25 + $0x10] sm:$0xff] }
  0x41   :  { %152 = vperm.xlu0 %2487, %v147_v0   ;;  %2488 = vset.pattern.permute.xlu1 %v2650_v2  ;;  %v148_v7 = vld [vmem:[%s2664_s5 + $0x8] sm:$0xff] }
  0x42   :  { %189 = vmatpush.msra.mxu0 %v166_v3  ;;  %v162_v8 = vld [vmem:[%s2689_s25 + $0x8] sm:$0xff] }
  0x44   :  { %190 = vmatpush.msra.mxu0 %v165_v4 }
  0x46   :  { %191 = vmatpush.msra.mxu0 %v164_v5 }
  0x48   :  { %192 = vmatpush.msra.mxu0 %v163_v6 }
  0x49   :  { %155 = vperm.xlu0 %2487, %v148_v7  }
  0x4a   :  { %193 = vmatpush.msra.mxu0 %v162_v8 }
  0x4b   :  { %76 = vsyncpa [#allocation3], 0  ;;  %v161_v9 = vld [vmem:[%s2689_s25] sm:$0xff]  ;;  %v208_v10 = vld [vmem:[%s2704_s8 + $0x18] sm:$0xff]  ;;  %v149_v16 = vlaneseq  ;;  %vm168_vm1 = vcmask 408576   ;;  %v2651_v19 = vmov 0.0  }
  0x4c   :  { %194 = vmatpush.msra.mxu0 %v161_v9  ;;  %v216_v11 = vld [vmem:[%s2704_s8 + $0x58] sm:$0xff]  ;;  %285 = vmatpush.msra.mxu2 %v208_v10  ;;  %v207_v13 = vld [vmem:[%s2704_s8 + $0x10] sm:$0xff]  ;;  %v206_v23 = vld [vmem:[%s2704_s8 + $0x8] sm:$0xff]  ;;  %vm269_vm4 = vcmask 261120   ;;  %vm916_vm5 = vcmask 64512   ;;  %vm1836_vm6 = vcmask 1045504  }
  0x4d   :  { %v220_v12 = vld [vmem:[%s2704_s8 + $0x78] sm:$0xff]  ;;  %325 = vmatpush.msra.mxu3 %v216_v11  ;;  %v215_v14 = vld [vmem:[%s2704_s8 + $0x50] sm:$0xff]  ;;  %v2856_v17 = vand.u32 127, %v149_v16  ;;  %v214_v24 = vld [vmem:[%s2704_s8 + $0x48] sm:$0xff]  ;;  %s3282_s0 = sld [smem:[#allocation9_spill]]  ;;  %vm1829_vm8 = vcmask 244736  }
  0x4e   :  { %v219_v15 = vld [vmem:[%s2704_s8 + $0x70] sm:$0xff]  ;;  %345 = vmatpush.msra.mxu1 %v220_v12  ;;  %286 = vmatpush.msra.mxu2 %v207_v13  ;;  %v218_v25 = vld [vmem:[%s2704_s8 + $0x68] sm:$0xff]  ;;  %v205_v26 = vld [vmem:[%s2704_s8] sm:$0xff]  ;;  %s3283_s5 = sld [smem:[#allocation11_spill]]  ;;  %s2313_s28 = sshll.u32 %s2839_s21, 4  ;;  %s2314_s28 = int_to_ptr.hbm [resolvable:$true] %s2313_s28 }
  0x4f   :  { %326 = vmatpush.msra.mxu3 %v215_v14  ;;  %v213_v27 = vld [vmem:[%s2704_s8 + $0x40] sm:$0xff]  ;;  %v212_v29 = vld [vmem:[%s2704_s8 + $0x38] sm:$0xff]  ;;  %v211_v33 = vld [vmem:[%s2704_s8 + $0x30] sm:$0xff]  ;;  %s3285_s25 = sld [smem:[#allocation8_spill]]  ;;  %s2601_s1 = sshra.s32 %s2314_s28, 4  ;;  %s2602_s1 = int_to_ptr.hbm [resolvable:$true] %s2601_s1 }
  0x50   :  { %346 = vmatpush.msra.mxu1 %v219_v15  ;;  %287 = vmatpush.msra.mxu2 %v206_v23  ;;  %v217_v28 = vld [vmem:[%s2704_s8 + $0x60] sm:$0xff]  ;;  %v228_v30 = vld [vmem:[%s2704_s8 + $0xb8] sm:$0xff]  ;;  %v227_v34 = vld [vmem:[%s2704_s8 + $0xb0] sm:$0xff]  ;;  %s3297_s22 = sld [smem:[#allocation20_spill]]  ;;  %s2603_s2 = scalar_lea.hbm %s2602_s1, 16 }
  0x51   :  { %327 = vmatpush.msra.mxu3 %v214_v24  ;;  %v232_v31 = vld [vmem:[%s2704_s8 + $0xd8] sm:$0xff]  ;;  %v231_v35 = vld [vmem:[%s2704_s8 + $0xd0] sm:$0xff]  ;;  %v210_v37 = vld [vmem:[%s2704_s8 + $0x28] sm:$0xff]  ;;  %s3298_s23 = sld [smem:[#allocation21_spill]]  ;;  %p2604_p0 = scmp.ne.s32.totalorder %s2602_s1, %s2603_s2 }
  0x52   :  { %347 = vmatpush.msra.mxu1 %v218_v25  ;;  %288 = vmatpush.msra.mxu2 %v205_v26  ;;  %v459_v32 = vld [vmem:[%s2714_s19 + $0xb8] sm:$0xff]  ;;  %v458_v36 = vld [vmem:[%s2714_s19 + $0xb0] sm:$0xff]  ;;  %v226_v38 = vld [vmem:[%s2704_s8 + $0xa8] sm:$0xff]  ;;  %s3299_s26 = sld [smem:[#allocation22_spill]]  ;;  %s2605_s7 = scalar_lea.hbm %s2839_s21, 16 }
  0x53   :  { %328 = vmatpush.msra.mxu3 %v213_v27  ;;  %612 = vmatpush.msrb.mxu0 %v459_v32  ;;  %v230_v39 = vld [vmem:[%s2704_s8 + $0xc8] sm:$0xff]  ;;  %v209_v41 = vld [vmem:[%s2704_s8 + $0x20] sm:$0xff]  ;;  %v667_v45 = vld [vmem:[%s2724_s30 + $0x38] sm:$0xff]  ;;  %p2606_p1 = scmp.lt.s32.totalorder %s2602_s1, %s2839_s21  ;;  %p2607_p2 = scmp.lt.s32.totalorder %s2605_s7, %s2603_s2 }
  0x54   :  { %348 = vmatpush.msra.mxu1 %v217_v28  ;;  %305 = vmatpush.msrb.mxu2 %v212_v29  ;;  %v457_v40 = vld [vmem:[%s2714_s19 + $0xa8] sm:$0xff]  ;;  %v225_v42 = vld [vmem:[%s2704_s8 + $0xa0] sm:$0xff]  ;;  %v666_v46 = vld [vmem:[%s2724_s30 + $0x30] sm:$0xff] }
  0x55   :  { %388 = vmatpush.msrb.mxu3 %v228_v30  ;;  %613 = vmatpush.msrb.mxu0 %v458_v36  ;;  %v229_v43 = vld [vmem:[%s2704_s8 + $0xc0] sm:$0xff]  ;;  %v665_v47 = vld [vmem:[%s2724_s30 + $0x28] sm:$0xff]  ;;  %v224_v52 = vld [vmem:[%s2704_s8 + $0x98] sm:$0xff]  ;;  %p2608_p3 = por %p2607_p2, %p2606_p1 }
  0x56   :  { %408 = vmatpush.msrb.mxu1 %v232_v31  ;;  %306 = vmatpush.msrb.mxu2 %v211_v33  ;;  %v456_v44 = vld [vmem:[%s2714_s19 + $0xa0] sm:$0xff]  ;;  %v439_v53 = vld [vmem:[%s2714_s19 + $0x18] sm:$0xff]  ;;  %v223_v55 = vld [vmem:[%s2704_s8 + $0x90] sm:$0xff] }
  0x57   :  { %389 = vmatpush.msrb.mxu3 %v227_v34  ;;  %614 = vmatpush.msrb.mxu0 %v457_v40  ;;  %v664_v48 = vld [vmem:[%s2724_s30 + $0x20] sm:$0xff]  ;;  %v447_v54 = vld [vmem:[%s2714_s19 + $0x58] sm:$0xff]  ;;  %v438_v56 = vld [vmem:[%s2714_s19 + $0x10] sm:$0xff]  ;;  %p2609_p4 = pnand %p2608_p3, %p2604_p0 }
  0x58   :  { %409 = vmatpush.msrb.mxu1 %v231_v35  ;;  %307 = vmatpush.msrb.mxu2 %v210_v37  ;;  %v202_v49 = vld [vmem:[%s2694_s29] sm:$0xff]  ;;  %v446_v57 = vld [vmem:[%s2714_s19 + $0x50] sm:$0xff]  ;;  %v222_v58 = vld [vmem:[%s2704_s8 + $0x88] sm:$0xff]  ;;  %s3287_s29 = sld [smem:[#allocation6_spill]] }
  0x59   :  { %390 = vmatpush.msrb.mxu3 %v226_v38  ;;  %615 = vmatpush.msrb.mxu0 %v456_v44  ;;  %v437_v59 = vld [vmem:[%s2714_s19 + $0x8] sm:$0xff]  ;;  %v221_v61 = vld [vmem:[%s2704_s8 + $0x80] sm:$0xff]  ;;  %v236_v2 = vld [vmem:[%s2704_s8 + $0xf8] sm:$0xff] }
  0x5a   :  { %410 = vmatpush.msrb.mxu1 %v230_v39  ;;  %308 = vmatpush.msrb.mxu2 %v209_v41  ;;  %v445_v60 = vld [vmem:[%s2714_s19 + $0x48] sm:$0xff]  ;;  %v436_v0 = vld [vmem:[%s2714_s19] sm:$0xff]  ;;  %v443_v3 = vld [vmem:[%s2714_s19 + $0x38] sm:$0xff] }
  0x5b   :  { %391 = vmatpush.msrb.mxu3 %v225_v42  ;;  %v444_v1 = vld [vmem:[%s2714_s19 + $0x40] sm:$0xff]  ;;  %v463_v4 = vld [vmem:[%s2714_s19 + $0xd8] sm:$0xff]  ;;  %v235_v6 = vld [vmem:[%s2704_s8 + $0xf0] sm:$0xff] }
  0x5c   :  { %411 = vmatpush.msrb.mxu1 %v229_v43  ;;  %v683_v5 = vld [vmem:[%s2724_s30 + $0xb8] sm:$0xff]  ;;  %v442_v7 = vld [vmem:[%s2714_s19 + $0x30] sm:$0xff]  ;;  %v234_v10 = vld [vmem:[%s2704_s8 + $0xe8] sm:$0xff] }
  0x5d   :  { %v462_v8 = vld [vmem:[%s2714_s19 + $0xd0] sm:$0xff]  ;;  %v441_v11 = vld [vmem:[%s2714_s19 + $0x28] sm:$0xff]  ;;  %v233_v14 = vld [vmem:[%s2704_s8 + $0xe0] sm:$0xff]  ;;  %s3289_s8 = sld [smem:[#allocation15_spill]] }
  0x5e   :  { %v682_v9 = vld [vmem:[%s2724_s30 + $0xb0] sm:$0xff]  ;;  %v461_v12 = vld [vmem:[%s2714_s19 + $0xc8] sm:$0xff]  ;;  %v440_v15 = vld [vmem:[%s2714_s19 + $0x20] sm:$0xff] }
  0x5f   :  { %v681_v13 = vld [vmem:[%s2724_s30 + $0xa8] sm:$0xff]  ;;  %v460_v16 = vld [vmem:[%s2714_s19 + $0xc0] sm:$0xff]  ;;  %v450_v23 = vld [vmem:[%s2714_s19 + $0x70] sm:$0xff] }
  0x60   :  { %v454_v24 = vld [vmem:[%s2714_s19 + $0x90] sm:$0xff]  ;;  %v449_v26 = vld [vmem:[%s2714_s19 + $0x68] sm:$0xff]  ;;  %v448_v29 = vld [vmem:[%s2714_s19 + $0x60] sm:$0xff] }
  0x61   :  { %v670_v25 = vld [vmem:[%s2724_s30 + $0x50] sm:$0xff]  ;;  %v453_v27 = vld [vmem:[%s2714_s19 + $0x88] sm:$0xff]  ;;  %v452_v30 = vld [vmem:[%s2714_s19 + $0x80] sm:$0xff] }
  0x62   :  { %v669_v28 = vld [vmem:[%s2724_s30 + $0x48] sm:$0xff]  ;;  %v467_v31 = vld [vmem:[%s2714_s19 + $0xf8] sm:$0xff]  ;;  %v668_v32 = vld [vmem:[%s2724_s30 + $0x40] sm:$0xff] }
  0x63   :  { %v663_v33 = vld [vmem:[%s2724_s30 + $0x18] sm:$0xff]  ;;  %v466_v35 = vld [vmem:[%s2714_s19 + $0xf0] sm:$0xff]  ;;  %v465_v38 = vld [vmem:[%s2714_s19 + $0xe8] sm:$0xff] }
  0x64   :  { %v687_v34 = vld [vmem:[%s2724_s30 + $0xd8] sm:$0xff]  ;;  %v662_v36 = vld [vmem:[%s2724_s30 + $0x10] sm:$0xff]  ;;  %v661_v39 = vld [vmem:[%s2724_s30 + $0x8] sm:$0xff] }
  0x65   :  { %v686_v37 = vld [vmem:[%s2724_s30 + $0xd0] sm:$0xff]  ;;  %v685_v40 = vld [vmem:[%s2724_s30 + $0xc8] sm:$0xff]  ;;  %v464_v41 = vld [vmem:[%s2714_s19 + $0xe0] sm:$0xff] }
  0x66   :  { %v660_v42 = vld [vmem:[%s2724_s30] sm:$0xff]  ;;  %v675_v43 = vld [vmem:[%s2724_s30 + $0x78] sm:$0xff] }
  0x67   :  { %v684_v44 = vld [vmem:[%s2724_s30 + $0xc0] sm:$0xff] }
  0xb3   :  { %v153_v18 = vpop.permute.xlu0 %152 }
  0xb4   :  { %vm157_vm2 = vcmp.eq.s32.totalorder %v2856_v17, %v153_v18  ;;  %v680_v18 = vld [vmem:[%s2724_s30 + $0xa0] sm:$0xff] }
  0xb5   :  { %v159_v20 = vsel %vm157_vm2, 1.0, %v2651_v19 }
  0xb6   :  { %2361 = vmatmul.msk.f32.vlgmr.msra.gmra.mxu0 %vm168_vm1, %v159_v20  ;;  %v451_v20 = vld [vmem:[%s2714_s19 + $0x78] sm:$0xff] }
  0xb7   :  { %756 = vmatpush.msra.mxu0 %v667_v45  ;;  %v679_v45 = vld [vmem:[%s2724_s30 + $0x98] sm:$0xff] }
  0xb9   :  { %757 = vmatpush.msra.mxu0 %v666_v46  ;;  %v674_v46 = vld [vmem:[%s2724_s30 + $0x70] sm:$0xff] }
  0xbb   :  { %v156_v21 = vpop.permute.xlu0 %155  ;;  %758 = vmatpush.msra.mxu0 %v665_v47  ;;  %v678_v47 = vld [vmem:[%s2724_s30 + $0x90] sm:$0xff] }
  0xbc   :  { %vm158_vm3 = vcmp.eq.s32.totalorder %v2856_v17, %v156_v21  ;;  %v455_v21 = vld [vmem:[%s2714_s19 + $0x98] sm:$0xff]  ;;  %s3291_s19 = sld [smem:[#allocation19_spill]] }
  0xbd   :  { %v160_v22 = vsel %vm158_vm3, 1.0, %v2651_v19  ;;  %759 = vmatpush.msra.mxu0 %v664_v48  ;;  %v673_v48 = vld [vmem:[%s2724_s30 + $0x68] sm:$0xff] }
  0xbe   :  { %2362 = vmatmul.msk.f32.gmra.mxu0 %vm168_vm1, %v160_v22  ;;  %v671_v22 = vld [vmem:[%s2724_s30 + $0x58] sm:$0xff]  ;;  %vm1725_vm1 = vcmask 523264  }
 0x133   :  { %v196_v50 = vpop.f32.mrf.mxu0 }
 0x134   :  { %v2889_v51 = vadd.f32 %v202_v49, %v196_v50  ;;  %v672_v50 = vld [vmem:[%s2724_s30 + $0x60] sm:$0xff] }
 0x136   :  { %2363 = vmatmul.msk.f32.vlgmr.msra.gmra.mxu2 %vm269_vm4, %v2889_v51  ;;  %2365 = vmatmul.msk.f32.vlgmr.msra.gmra.mxu3 %vm269_vm4, %v2889_v51 }
 0x137   :  { %2366 = vmatmul.msk.f32.vlgmr.msra.gmra.mxu1 %vm269_vm4, %v2889_v51  ;;  %368 = vmatpush.msra.mxu2 %v224_v52  ;;  %v676_v52 = vld [vmem:[%s2724_s30 + $0x80] sm:$0xff] }
 0x138   :  { %512 = vmatpush.msra.mxu3 %v439_v53  ;;  %552 = vmatpush.msra.mxu1 %v447_v54  ;;  %v691_v53 = vld [vmem:[%s2724_s30 + $0xf8] sm:$0xff]  ;;  %v690_v54 = vld [vmem:[%s2724_s30 + $0xf0] sm:$0xff] }
 0x139   :  { %369 = vmatpush.msra.mxu2 %v223_v55  ;;  %v689_v55 = vld [vmem:[%s2724_s30 + $0xe8] sm:$0xff] }
 0x13a   :  { %513 = vmatpush.msra.mxu3 %v438_v56  ;;  %553 = vmatpush.msra.mxu1 %v446_v57  ;;  %v688_v56 = vld [vmem:[%s2724_s30 + $0xe0] sm:$0xff] }
 0x13b   :  { %v199_v62 = vpop.f32.mrf.mxu0  ;;  %370 = vmatpush.msra.mxu2 %v222_v58 }
 0x13c   :  { %v2907_v63 = vadd.f32 %v202_v49, %v199_v62  ;;  %514 = vmatpush.msra.mxu3 %v437_v59  ;;  %554 = vmatpush.msra.mxu1 %v445_v60  ;;  %v677_v49 = vld [vmem:[%s2724_s30 + $0x88] sm:$0xff]  ;;  %s3293_s30 = sld [smem:[#allocation16_spill]] }
 0x13d   :  { %371 = vmatpush.msra.mxu2 %v221_v61 }
 0x13e   :  { %2364 = vmatmul.msk.f32.vlgmr.msrb.gmra.mxu2 %vm269_vm4, %v2889_v51  ;;  %2368 = vmatmul.msk.f32.vlgmr.msrb.gmra.mxu3 %vm269_vm4, %v2907_v63 }
 0x13f   :  { %2369 = vmatmul.msk.f32.vlgmr.msrb.gmra.mxu1 %vm269_vm4, %v2907_v63  ;;  %2376 = vmatmul.msk.f32.vlgmr.msrb.gmra.mxu0 %vm269_vm4, %v2907_v63 }
 0x140   :  { %515 = vmatpush.msra.mxu3 %v436_v0  ;;  %555 = vmatpush.msra.mxu1 %v444_v1  ;;  %v2496_v0 = vld [vmem:[%s2719_s24 + $0x2] ss:$0 sm:$0xff] }
 0x141   :  { %428 = vmatpush.msrb.mxu2 %v236_v2  ;;  %836 = vmatpush.msrb.mxu0 %v683_v5  ;;  %v2491_v1 = vld [vmem:[%s2709_s14 + $0x2] ss:$0 sm:$0xff] }
 0x142   :  { %532 = vmatpush.msrb.mxu3 %v443_v3  ;;  %632 = vmatpush.msrb.mxu1 %v463_v4  ;;  %v2499_v4 = vld [vmem:[%s2719_s24] ss:$0 sm:$0xff] }
 0x143   :  { %429 = vmatpush.msrb.mxu2 %v235_v6  ;;  %837 = vmatpush.msrb.mxu0 %v682_v9 }
 0x144   :  { %533 = vmatpush.msrb.mxu3 %v442_v7  ;;  %633 = vmatpush.msrb.mxu1 %v462_v8  ;;  %v2490_v7 = vld [vmem:[%s2709_s14] ss:$0 sm:$0xff] }
 0x145   :  { %430 = vmatpush.msrb.mxu2 %v234_v10  ;;  %838 = vmatpush.msrb.mxu0 %v681_v13  ;;  %v2500_v10 = vld [vmem:[%s2719_s24 + $0x6] ss:$0 sm:$0xff] }
 0x146   :  { %534 = vmatpush.msrb.mxu3 %v441_v11  ;;  %2367 = vmatmul.msk.f32.vlgmr.msra.gmra.mxu2 %vm269_vm4, %v2907_v63 }
 0x147   :  { %2371 = vmatmul.msk.f32.vlgmr.msra.gmra.mxu3 %vm269_vm4, %v2889_v51  ;;  %2373 = vmatmul.msk.f32.vlgmr.msra.gmra.mxu1 %vm269_vm4, %v2889_v51 }
 0x148   :  { %2380 = vmatmul.msk.f32.vlgmr.msra.gmra.mxu0 %vm269_vm4, %v2889_v51  ;;  %634 = vmatpush.msrb.mxu1 %v461_v12  ;;  %v2492_v12 = vld [vmem:[%s2709_s14 + $0x6] ss:$0 sm:$0xff] }
 0x149   :  { %431 = vmatpush.msrb.mxu2 %v233_v14  ;;  %535 = vmatpush.msrb.mxu3 %v440_v15 }
 0x14a   :  { %635 = vmatpush.msrb.mxu1 %v460_v16  ;;  %839 = vmatpush.msrb.mxu0 %v680_v18  ;;  %v2503_v16 = vld [vmem:[%s2719_s24 + $0x1] ss:$0 sm:$0xff]  ;;  %v2493_v18 = vld [vmem:[%s2719_s24 + $0x5] ss:$0 sm:$0xff] }
 0x14b   :  { %572 = vmatpush.msra.mxu2 %v451_v20  ;;  %592 = vmatpush.msra.mxu3 %v455_v21  ;;  %v2494_v21 = vld [vmem:[%s2709_s14 + $0x1] ss:$0 sm:$0xff] }
 0x14c   :  { %776 = vmatpush.msra.mxu1 %v671_v22 }
 0x14d   :  { %573 = vmatpush.msra.mxu2 %v450_v23  ;;  %593 = vmatpush.msra.mxu3 %v454_v24  ;;  %v2504_v24 = vld [vmem:[%s2729_s6 + $0x2] ss:$0 sm:$0xff] }
 0x14e   :  { %2370 = vmatmul.msk.f32.vlgmr.msrb.gmra.mxu2 %vm269_vm4, %v2907_v63  ;;  %777 = vmatpush.msra.mxu1 %v670_v25  ;;  %v2497_v25 = vld [vmem:[%s2729_s6 + $0x1] ss:$0 sm:$0xff] }
 0x14f   :  { %2372 = vmatmul.msk.f32.vlgmr.msrb.gmra.mxu3 %vm269_vm4, %v2889_v51  ;;  %2377 = vmatmul.msk.f32.vlgmr.msrb.gmra.mxu1 %vm269_vm4, %v2907_v63 }
 0x150   :  { %2384 = vmatmul.msk.f32.vlgmr.msrb.gmra.mxu0 %vm269_vm4, %v2907_v63  ;;  %574 = vmatpush.msra.mxu2 %v449_v26 }
 0x151   :  { %594 = vmatpush.msra.mxu3 %v453_v27  ;;  %778 = vmatpush.msra.mxu1 %v669_v28 }
 0x152   :  { %575 = vmatpush.msra.mxu2 %v448_v29 }
 0x153   :  { %595 = vmatpush.msra.mxu3 %v452_v30  ;;  %779 = vmatpush.msra.mxu1 %v668_v32 }
 0x154   :  { %652 = vmatpush.msrb.mxu2 %v467_v31 }
 0x155   :  { %736 = vmatpush.msrb.mxu3 %v663_v33  ;;  %856 = vmatpush.msrb.mxu1 %v687_v34  ;;  %v2505_v33 = vld [vmem:[%s2719_s24 + $0x3] ss:$0 sm:$0xff]  ;;  %v2506_v34 = vld [vmem:[%s2719_s24 + $0x4] ss:$0 sm:$0xff] }
 0x156   :  { %653 = vmatpush.msrb.mxu2 %v466_v35  ;;  %v2489_v35 = vld [vmem:[%s2709_s14 + $0x3] ss:$0 sm:$0xff] }
 0x157   :  { %2374 = vmatmul.msk.f32.vlgmr.msra.gmra.mxu2 %vm269_vm4, %v2889_v51  ;;  %2375 = vmatmul.msk.f32.vlgmr.msra.gmra.mxu3 %vm269_vm4, %v2907_v63 }
 0x158   :  { %2381 = vmatmul.msk.f32.vlgmr.msra.gmra.mxu1 %vm269_vm4, %v2889_v51  ;;  %737 = vmatpush.msrb.mxu3 %v662_v36 }
 0x159   :  { %857 = vmatpush.msrb.mxu1 %v686_v37  ;;  %654 = vmatpush.msrb.mxu2 %v465_v38  ;;  %v2507_v38 = vld [vmem:[%s2729_s6 + $0x6] ss:$0 sm:$0xff] }
 0x15a   :  { %738 = vmatpush.msrb.mxu3 %v661_v39  ;;  %v2495_v39 = vld [vmem:[%s2709_s14 + $0x5] ss:$0 sm:$0xff] }
 0x15b   :  { %858 = vmatpush.msrb.mxu1 %v685_v40  ;;  %655 = vmatpush.msrb.mxu2 %v464_v41  ;;  %v2498_v40 = vld [vmem:[%s2709_s14 + $0x4] ss:$0 sm:$0xff] }
 0x15c   :  { %739 = vmatpush.msrb.mxu3 %v660_v42 }
 0x15d   :  { %796 = vmatpush.msra.mxu2 %v675_v43  ;;  %859 = vmatpush.msrb.mxu1 %v684_v44  ;;  %v2501_v43 = vld [vmem:[%s2729_s6 + $0x5] ss:$0 sm:$0xff] }
 0x15e   :  { %816 = vmatpush.msra.mxu3 %v679_v45 }
 0x15f   :  { %797 = vmatpush.msra.mxu2 %v674_v46  ;;  %2379 = vmatmul.msk.f32.vlgmr.msrb.gmra.mxu3 %vm269_vm4, %v2889_v51 }
 0x160   :  { %2378 = vmatmul.msk.f32.vlgmr.msrb.gmra.mxu2 %vm269_vm4, %v2907_v63  ;;  %2385 = vmatmul.msk.f32.vlgmr.msrb.gmra.mxu1 %vm269_vm4, %v2907_v63 }
 0x161   :  { %817 = vmatpush.msra.mxu3 %v678_v47  ;;  %798 = vmatpush.msra.mxu2 %v673_v48 }
 0x163   :  { %818 = vmatpush.msra.mxu3 %v677_v49  ;;  %799 = vmatpush.msra.mxu2 %v672_v50  ;;  %v2508_v50 = vld [vmem:[%s2719_s24 + $0x7] ss:$0 sm:$0xff]  ;;  %s3292_s24 = sld [smem:[#allocation17_spill]] }
 0x165   :  { %819 = vmatpush.msra.mxu3 %v676_v52  ;;  %876 = vmatpush.msrb.mxu2 %v691_v53  ;;  %v2509_v52 = vld [vmem:[%s2729_s6] ss:$0 sm:$0xff] }
 0x167   :  { %877 = vmatpush.msrb.mxu2 %v690_v54  ;;  %2383 = vmatmul.msk.f32.vlgmr.msra.gmra.mxu3 %vm269_vm4, %v2907_v63  ;;  %v2502_v54 = vld [vmem:[%s2709_s14 + $0x7] ss:$0 sm:$0xff]  ;;  %s3290_s14 = sld [smem:[#allocation18_spill]] }
 0x168   :  { %2382 = vmatmul.msk.f32.vlgmr.msra.gmra.mxu2 %vm269_vm4, %v2889_v51 }
 0x169   :  { %878 = vmatpush.msrb.mxu2 %v689_v55 }
 0x16b   :  { %879 = vmatpush.msrb.mxu2 %v688_v56 }
 0x170   :  { %2386 = vmatmul.msk.f32.vlgmr.msrb.gmra.mxu2 %vm269_vm4, %v2907_v63 }
 0x1b4   :  { %v3005_v57 = vpop.f32.mrf.mxu1 }
 0x1b5   :  { %v351_v46 = vadd.f32 %v2489_v35, %v3005_v57  ;;  %v2514_v35 = vld [vmem:[%s2674_s13 + $0x6] ss:$0 sm:$0xff] }
 0x1b9   :  { %v290_v58 = vpop.f32.mrf.mxu2  ;;  %v330_v59 = vpop.f32.mrf.mxu3 }
 0x1ba   :  { %v331_v5 = vadd.f32 %v2491_v1, %v330_v59  ;;  %v291_v14 = vadd.f32 %v2490_v7, %v290_v58  ;;  %v2516_v7 = vld [vmem:[%s2674_s13 + $0x1] ss:$0 sm:$0xff] }
 0x1bc   :  { %v413_v60 = vpop.f32.mrf.mxu1  ;;  %v617_v6 = vpop.f32.mrf.mxu0 }
 0x1bd   :  { %v414_v20 = vadd.f32 %v2492_v12, %v413_v60  ;;  %v618_v28 = vadd.f32 %v2493_v18, %v617_v6  ;;  %v2510_v60 = vld [vmem:[%s2729_s6 + $0x3] ss:$0 sm:$0xff]  ;;  %v2515_v6 = vld [vmem:[%s2674_s13] ss:$0 sm:$0xff]  ;;  %v2517_v18 = vld [vmem:[%s2674_s13 + $0x5] ss:$0 sm:$0xff] }
 0x1c1   :  { %v310_v61 = vpop.f32.mrf.mxu2  ;;  %v393_v62 = vpop.f32.mrf.mxu3 }
 0x1c2   :  { %v311_v30 = vadd.f32 %v2494_v21, %v310_v61  ;;  %v394_v48 = vadd.f32 %v2495_v39, %v393_v62  ;;  %v2511_v61 = vld [vmem:[%s2729_s6 + $0x4] ss:$0 sm:$0xff]  ;;  %v2518_v21 = vld [vmem:[%s2674_s13 + $0x3] ss:$0 sm:$0xff] }
 0x1c4   :  { %v557_v2 = vpop.f32.mrf.mxu1 }
 0x1c5   :  { %v558_v3 = vadd.f32 %v2496_v0, %v557_v2  ;;  %v761_v26 = vpop.f32.mrf.mxu0 }
 0x1c6   :  { %v762_v32 = vadd.f32 %v2497_v25, %v761_v26 }
 0x1c7   :  { %2391 = vmatpush.xpose.msk.msra.mxu1 %vm916_vm5, %v558_v3  ;;  %v2512_v3 = vld [vmem:[%s2729_s6 + $0x7] ss:$0 sm:$0xff]  ;;  %s3294_s6 = sld [smem:[#allocation13_spill]] }
 0x1c9   :  { %v373_v8 = vpop.f32.mrf.mxu2 }
 0x1ca   :  { %v517_v9 = vpop.f32.mrf.mxu3  ;;  %2392 = vmatmul.msk.f32.vlgmr.msra.gmra.mxu1 %vm916_vm5, %v331_v5  ;;  %v374_v49 = vadd.f32 %v2498_v40, %v373_v8 }
 0x1cb   :  { %v518_v11 = vadd.f32 %v2499_v4, %v517_v9 }
 0x1cc   :  { %v637_v13 = vpop.f32.mrf.mxu1 }
 0x1cd   :  { %2387 = vmatpush.xpose.msk.msrb.mxu3 %vm916_vm5, %v518_v11  ;;  %v638_v15 = vadd.f32 %v2500_v10, %v637_v13  ;;  %v841_v44 = vpop.f32.mrf.mxu0  ;;  %v2513_v13 = vld [vmem:[%s2674_s13 + $0x2] ss:$0 sm:$0xff] }
 0x1ce   :  { %v842_v53 = vadd.f32 %v2501_v43, %v841_v44 }
 0x1cf   :  { %2399 = vmatpush.xpose.msk.msrb.mxu1 %vm916_vm5, %v638_v15 }
 0x1d0   :  { %2388 = vmatmul.msk.f32.vlgmr.msrb.gmra.mxu3 %vm916_vm5, %v291_v14 }
 0x1d1   :  { %v433_v22 = vpop.f32.mrf.mxu2 }
 0x1d2   :  { %v537_v23 = vpop.f32.mrf.mxu3  ;;  %2400 = vmatmul.msk.f32.vlgmr.msrb.gmra.mxu1 %vm916_vm5, %v414_v20  ;;  %v434_v59 = vadd.f32 %v2502_v54, %v433_v22 }
 0x1d3   :  { %v538_v27 = vadd.f32 %v2503_v16, %v537_v23  ;;  %v2519_v23 = vld [vmem:[%s2674_s13 + $0x4] ss:$0 sm:$0xff] }
 0x1d5   :  { %v781_v29 = vpop.f32.mrf.mxu1  ;;  %2389 = vmatpush.xpose.msk.msra.mxu0 %vm916_vm5, %v538_v27 }
 0x1d6   :  { %v782_v31 = vadd.f32 %v2504_v24, %v781_v29 }
 0x1d8   :  { %1277 = vmatpush.msra.mxu1 %v782_v31  ;;  %2390 = vmatmul.msk.f32.vlgmr.msra.gmra.mxu0 %vm916_vm5, %v311_v30 }
 0x1d9   :  { %2397 = vmatpush.xpose.msk.msrb.mxu0 %vm916_vm5, %v618_v28 }
 0x1da   :  { %v577_v36 = vpop.f32.mrf.mxu2  ;;  %v597_v37 = vpop.f32.mrf.mxu3 }
 0x1db   :  { %v578_v41 = vadd.f32 %v2505_v33, %v577_v36  ;;  %v598_v42 = vadd.f32 %v2506_v34, %v597_v37 }
 0x1dd   :  { %1254 = vmatpush.msra.mxu0 %v762_v32  ;;  %v861_v45 = vpop.f32.mrf.mxu1  ;;  %2393 = vmatpush.xpose.msk.msra.mxu2 %vm916_vm5, %v578_v41  ;;  %v2520_v32 = vld [vmem:[%s2674_s13 + $0x7] ss:$0 sm:$0xff]  ;;  %s3284_s13 = sld [smem:[#allocation7_spill]] }
 0x1de   :  { %2395 = vmatpush.xpose.msk.msra.mxu3 %vm916_vm5, %v598_v42  ;;  %v862_v47 = vadd.f32 %v2507_v38, %v861_v45 }
 0x1e0   :  { %1369 = vmatpush.msrb.mxu1 %v862_v47  ;;  %2394 = vmatmul.msk.f32.vlgmr.msra.gmra.mxu2 %vm916_vm5, %v351_v46 }
 0x1e1   :  { %2396 = vmatmul.msk.f32.vlgmr.msra.gmra.mxu3 %vm916_vm5, %v374_v49  ;;  %2398 = vmatmul.msk.f32.vlgmr.msrb.gmra.mxu0 %vm916_vm5, %v394_v48 }
 0x1e2   :  { %1346 = vmatpush.msrb.mxu0 %v842_v53  ;;  %v741_v56 = vpop.f32.mrf.mxu3 }
 0x1e3   :  { %v657_v55 = vpop.f32.mrf.mxu2  ;;  %v742_v58 = vadd.f32 %v2509_v52, %v741_v56 }
 0x1e4   :  { %v658_v57 = vadd.f32 %v2508_v50, %v657_v55 }
 0x1e5   :  { %1231 = vmatpush.msrb.mxu3 %v742_v58 }
 0x1e6   :  { %2401 = vmatpush.xpose.msk.msrb.mxu2 %vm916_vm5, %v658_v57 }
 0x1e9   :  { %2402 = vmatmul.msk.f32.vlgmr.msrb.gmra.mxu2 %vm916_vm5, %v434_v59 }
 0x1ea   :  { %v821_v0 = vpop.f32.mrf.mxu3 }
 0x1eb   :  { %v801_v62 = vpop.f32.mrf.mxu2  ;;  %v822_v2 = vadd.f32 %v2511_v61, %v821_v0 }
 0x1ec   :  { %v802_v1 = vadd.f32 %v2510_v60, %v801_v62 }
 0x1ed   :  { %1323 = vmatpush.msra.mxu3 %v822_v2 }
 0x1ee   :  { %1300 = vmatpush.msra.mxu2 %v802_v1 }
 0x1f3   :  { %v881_v4 = vpop.f32.mrf.mxu2 }
 0x1f4   :  { %v882_v5 = vadd.f32 %v2512_v3, %v881_v4 }
 0x1f6   :  { %1392 = vmatpush.msrb.mxu2 %v882_v5 }
 0x247   :  { %v992_v15 = vpop.f32.mrf.mxu1 }
 0x248   :  { %v993_v16 = vadd.f32 %v2513_v13, %v992_v15 }
 0x24a   :  { %v1131_v20 = vsel %vm916_vm5, %v993_v16, -inf }
 0x24f   :  { %v1096_v37 = vpop.f32.mrf.mxu1 }
 0x250   :  { %v1097_v38 = vadd.f32 %v2514_v35, %v1096_v37 }
 0x252   :  { %v1143_v39 = vsel %vm916_vm5, %v1097_v38, -inf }
 0x253   :  { %v940_v8 = vpop.f32.mrf.mxu3 }
 0x254   :  { %v941_v9 = vadd.f32 %v2515_v6, %v940_v8 }
 0x255   :  { %v966_v10 = vpop.f32.mrf.mxu0 }
 0x256   :  { %v967_v11 = vadd.f32 %v2516_v7, %v966_v10  ;;  %v1125_v12 = vsel %vm916_vm5, %v941_v9, -inf }
 0x257   :  { %1126 = vmax.xlane.f32.xlu1 %v1125_v12 }
 0x258   :  { %v1128_v14 = vsel %vm916_vm5, %v967_v11, -inf }
 0x259   :  { %1129 = vmax.xlane.f32.xlu2 %v1128_v14 }
 0x25e   :  { %v1070_v22 = vpop.f32.mrf.mxu0 }
 0x25f   :  { %v1071_v25 = vadd.f32 %v2517_v18, %v1070_v22 }
 0x261   :  { %1132 = vmax.xlane.f32.xlu2 %v1131_v20  ;;  %v1140_v31 = vsel %vm916_vm5, %v1071_v25, -inf }
 0x263   :  { %v1018_v24 = vpop.f32.mrf.mxu2 }
 0x264   :  { %v1019_v26 = vadd.f32 %v2518_v21, %v1018_v24  ;;  %v1044_v27 = vpop.f32.mrf.mxu3 }
 0x265   :  { %v1045_v28 = vadd.f32 %v2519_v23, %v1044_v27 }
 0x266   :  { %v1134_v29 = vsel %vm916_vm5, %v1019_v26, -inf }
 0x267   :  { %1135 = vmax.xlane.f32.xlu1 %v1134_v29  ;;  %v1137_v30 = vsel %vm916_vm5, %v1045_v28, -inf }
 0x268   :  { %1138 = vmax.xlane.f32.xlu0 %v1137_v30 }
 0x269   :  { %1141 = vmax.xlane.f32.xlu2 %v1140_v31 }
 0x26c   :  { %v1122_v33 = vpop.f32.mrf.mxu2 }
 0x26d   :  { %v1123_v34 = vadd.f32 %v2520_v32, %v1122_v33 }
 0x26f   :  { %v1146_v36 = vsel %vm916_vm5, %v1123_v34, -inf }
 0x270   :  { %1147 = vmax.xlane.f32.xlu1 %v1146_v36 }
 0x278   :  { %1144 = vmax.xlane.f32.xlu1 %v1143_v39 }
 0x2ca   :  { %v1127_v40 = vpop.xlane.xlu1 %1126 }
 0x2cb   :  { %v1149_v41 = vsub.f32 %v941_v9, %v1127_v40 }
 0x2cc   :  { %v1130_v42 = vpop.xlane.xlu2 %1129 }
 0x2cd   :  { %v1157_v43 = vmul.f32 1.442695, %v1149_v41  ;;  %v1150_v44 = vsub.f32 %v967_v11, %v1130_v42 }
 0x2cf   :  { %2535 = vpow2.f32 %v1157_v43  ;;  %v1159_v45 = vmul.f32 1.442695, %v1150_v44  ;;  %v1397_v44 = vld [vmem:[%s2734_s12] sm:$0xff] }
 0x2d1   :  { %2537 = vpow2.f32 %v1159_v45  ;;  %v1398_v45 = vld [vmem:[%s2734_s12 + $0x8] sm:$0xff] }
 0x2d4   :  { %v1133_v46 = vpop.xlane.xlu2 %1132 }
 0x2d5   :  { %v2536_v47 = vpop.eup %2535  ;;  %v1151_v56 = vsub.f32 %v993_v16, %v1133_v46  ;;  %v1400_v46 = vld [vmem:[%s2734_s12 + $0x18] sm:$0xff] }
 0x2d6   :  { %v1173_v48 = vsel %vm916_vm5, %v2536_v47, 0.0 }
 0x2d7   :  { %1174 = vadd.xlane.f32.xlu2 %v1173_v48  ;;  %v2538_v50 = vpop.eup %2537  ;;  %v1161_v61 = vmul.f32 1.442695, %v1151_v56  ;;  %v1399_v48 = vld [vmem:[%s2734_s12 + $0x10] sm:$0xff] }
 0x2d8   :  { %v1176_v60 = vsel %vm916_vm5, %v2538_v50, 0.0 }
 0x2da   :  { %v1136_v49 = vpop.xlane.xlu1 %1135 }
 0x2db   :  { %v1152_v52 = vsub.f32 %v1019_v26, %v1136_v49  ;;  %v1139_v53 = vpop.xlane.xlu0 %1138  ;;  %v1402_v49 = vld [vmem:[%s2734_s12 + $0x28] sm:$0xff] }
 0x2dc   :  { %v1153_v54 = vsub.f32 %v1045_v28, %v1139_v53  ;;  %v1142_v55 = vpop.xlane.xlu2 %1141 }
 0x2dd   :  { %v1163_v57 = vmul.f32 1.442695, %v1152_v52  ;;  %v1154_v59 = vsub.f32 %v1071_v25, %v1142_v55  ;;  %v1404_v52 = vld [vmem:[%s2734_s12 + $0x38] sm:$0xff] }
 0x2de   :  { %v1165_v58 = vmul.f32 1.442695, %v1153_v54  ;;  %v1403_v54 = vld [vmem:[%s2734_s12 + $0x30] sm:$0xff] }
 0x2df   :  { %2539 = vpow2.f32 %v1163_v57  ;;  %1177 = vadd.xlane.f32.xlu2 %v1176_v60  ;;  %v1167_v62 = vmul.f32 1.442695, %v1154_v59 }
 0x2e0   :  { %2541 = vpow2.f32 %v1165_v58 }
 0x2e1   :  { %2543 = vpow2.f32 %v1161_v61 }
 0x2e2   :  { %2545 = vpow2.f32 %v1167_v62 }
 0x2e3   :  { %v1148_v0 = vpop.xlane.xlu1 %1147 }
 0x2e4   :  { %v1156_v2 = vsub.f32 %v1123_v34, %v1148_v0 }
 0x2e5   :  { %v2540_v1 = vpop.eup %2539 }
 0x2e6   :  { %v2542_v3 = vpop.eup %2541  ;;  %v1182_v4 = vsel %vm916_vm5, %v2540_v1, 0.0  ;;  %v1171_v6 = vmul.f32 1.442695, %v1156_v2 }
 0x2e7   :  { %1183 = vadd.xlane.f32.xlu1 %v1182_v4  ;;  %v1185_v5 = vsel %vm916_vm5, %v2542_v3, 0.0  ;;  %v2544_v8 = vpop.eup %2543 }
 0x2e8   :  { %1186 = vadd.xlane.f32.xlu2 %v1185_v5  ;;  %v2546_v9 = vpop.eup %2545  ;;  %2547 = vpow2.f32 %v1171_v6  ;;  %v1179_v11 = vsel %vm916_vm5, %v2544_v8, 0.0 }
 0x2e9   :  { %v1188_v12 = vsel %vm916_vm5, %v2546_v9, 0.0 }
 0x2eb   :  { %v1145_v7 = vpop.xlane.xlu1 %1144 }
 0x2ec   :  { %v1155_v10 = vsub.f32 %v1097_v38, %v1145_v7  ;;  %v2521_v7 = vld [vmem:[%s2739_s20] ss:$0 sm:$0xff]  ;;  %s3296_s20 = sld [smem:[#allocation5_spill]] }
 0x2ee   :  { %v1169_v13 = vmul.f32 1.442695, %v1155_v10  ;;  %v2548_v14 = vpop.eup %2547 }
 0x2ef   :  { %1180 = vadd.xlane.f32.xlu1 %v1179_v11  ;;  %v1194_v15 = vsel %vm916_vm5, %v2548_v14, 0.0 }
 0x2f0   :  { %1189 = vadd.xlane.f32.xlu2 %v1188_v12  ;;  %2549 = vpow2.f32 %v1169_v13 }
 0x2f6   :  { %v2550_v16 = vpop.eup %2549 }
 0x2f7   :  { %1195 = vadd.xlane.f32.xlu1 %v1194_v15  ;;  %v1191_v18 = vsel %vm916_vm5, %v2550_v16, 0.0 }
 0x2ff   :  { %1192 = vadd.xlane.f32.xlu1 %v1191_v18 }
 0x34a   :  { %v1175_v20 = vpop.xlane.xlu2 %1174 }
 0x34b   :  { %2551 = vrcp.f32 %v1175_v20 }
 0x351   :  { %v2552_v21 = vpop.eup %2551 }
 0x352   :  { %v1205_v22 = vmul.f32 %v2552_v21, %v2536_v47  ;;  %v1178_v23 = vpop.xlane.xlu2 %1177  ;;  %v1401_v47 = vld [vmem:[%s2734_s12 + $0x20] sm:$0xff]  ;;  %s3295_s12 = sld [smem:[#allocation14_spill]] }
 0x353   :  { %2553 = vrcp.f32 %v1178_v23 }
 0x354   :  { %2403 = vmatmul.msk.f32.vlgmr.msrb.gmra.mxu3 %vm916_vm5, %v1205_v22 }
 0x355   :  { %1423 = vmatpush.msrb.mxu3 %v1397_v44 }
 0x359   :  { %v2554_v24 = vpop.eup %2553 }
 0x35a   :  { %v1206_v25 = vmul.f32 %v2554_v24, %v2538_v50  ;;  %v1184_v26 = vpop.xlane.xlu1 %1183 }
 0x35b   :  { %2555 = vrcp.f32 %v1184_v26  ;;  %v1187_v27 = vpop.xlane.xlu2 %1186 }
 0x35c   :  { %2557 = vrcp.f32 %v1187_v27  ;;  %2404 = vmatmul.msk.f32.vlgmr.msra.gmra.mxu0 %vm916_vm5, %v1206_v25 }
 0x35d   :  { %1446 = vmatpush.msra.mxu0 %v1398_v45 }
 0x361   :  { %v2556_v28 = vpop.eup %2555 }
 0x362   :  { %v2558_v29 = vpop.eup %2557  ;;  %v1208_v30 = vmul.f32 %v2556_v28, %v2540_v1  ;;  %v1181_v31 = vpop.xlane.xlu1 %1180  ;;  %v1813_v28 = vld [vmem:[%s2669_s9] sm:$0xff] }
 0x363   :  { %v1209_v32 = vmul.f32 %v2558_v29, %v2542_v3  ;;  %2559 = vrcp.f32 %v1181_v31  ;;  %v1190_v33 = vpop.xlane.xlu2 %1189  ;;  %v2652_v29 = vmov 32.0  }
 0x364   :  { %2561 = vrcp.f32 %v1190_v33  ;;  %2406 = vmatmul.msk.f32.vlgmr.msra.gmra.mxu2 %vm916_vm5, %v1208_v30 }
 0x365   :  { %2407 = vmatmul.msk.f32.vlgmr.msra.gmra.mxu3 %vm916_vm5, %v1209_v32  ;;  %1492 = vmatpush.msra.mxu2 %v1400_v46 }
 0x366   :  { %1515 = vmatpush.msra.mxu3 %v1401_v47 }
 0x369   :  { %v2560_v34 = vpop.eup %2559 }
 0x36a   :  { %v2562_v35 = vpop.eup %2561  ;;  %v1207_v36 = vmul.f32 %v2560_v34, %v2544_v8  ;;  %v1196_v37 = vpop.xlane.xlu1 %1195  ;;  %v1828_v34 = vld [vmem:[%s2699_s3 + $0x18] sm:$0x3f] }
 0x36b   :  { %v1210_v38 = vmul.f32 %v2562_v35, %v2546_v9  ;;  %2563 = vrcp.f32 %v1196_v37  ;;  %v1827_v35 = vld [vmem:[%s2699_s3 + $0x10] sm:$0xff]  ;;  %v1826_v37 = vld [vmem:[%s2699_s3 + $0x8] sm:$0xff] }
 0x36c   :  { %2405 = vmatmul.msk.f32.vlgmr.msra.gmra.mxu1 %vm916_vm5, %v1207_v36 }
 0x36d   :  { %2408 = vmatmul.msk.f32.vlgmr.msrb.gmra.mxu0 %vm916_vm5, %v1210_v38  ;;  %1469 = vmatpush.msra.mxu1 %v1399_v48 }
 0x36e   :  { %1538 = vmatpush.msrb.mxu0 %v1402_v49 }
 0x371   :  { %v2564_v39 = vpop.eup %2563 }
 0x372   :  { %v1212_v40 = vmul.f32 %v2564_v39, %v2548_v14  ;;  %v1193_v41 = vpop.xlane.xlu1 %1192 }
 0x373   :  { %2565 = vrcp.f32 %v1193_v41 }
 0x374   :  { %2410 = vmatmul.msk.f32.vlgmr.msrb.gmra.mxu2 %vm916_vm5, %v1212_v40  ;;  %2567 = vrcp.f32 %v2652_v29  ;;  %v1715_v29 = vld [vmem:[%s3283_s5 + $0x10] sm:$0xff] }
 0x375   :  { %1584 = vmatpush.msrb.mxu2 %v1404_v52  ;;  %v1677_v52 = vld [vmem:[%s3282_s0 + $0x18] sm:$0xff] }
 0x379   :  { %v2566_v42 = vpop.eup %2565 }
 0x37a   :  { %v1211_v43 = vmul.f32 %v2566_v42, %v2550_v16  ;;  %v2568_v30 = vpop.eup %2567  ;;  %v1825_v42 = vld [vmem:[%s2699_s3] sm:$0xff]  ;;  %s3288_s3 = sld [smem:[#allocation12_spill]] }
 0x37b   :  { %v1620_v31 = vmul.f32 32.0, %v2568_v30  ;;  %vm1624_vm7 = vweird.f32 %v2568_v30 }
 0x37c   :  { %2409 = vmatmul.msk.f32.vlgmr.msrb.gmra.mxu1 %vm916_vm5, %v1211_v43 }
 0x37d   :  { %1561 = vmatpush.msrb.mxu1 %v1403_v54  ;;  %v1621_v32 = vsub.f32 1.0, %v1620_v31  ;;  %v1675_v54 = vld [vmem:[%s3282_s0 + $0x8] sm:$0xff]  ;;  %v1713_v31 = vld [vmem:[%s3283_s5] sm:$0xff] }
 0x37f   :  { %v1622_v33 = vmul.f32 %v2568_v30, %v1621_v32 }
 0x381   :  { %v1623_v36 = vadd.f32 %v2568_v30, %v1622_v33 }
 0x3d7   :  { %v1233_v50 = vpop.f32.mrf.mxu3 }
 0x3d8   :  { %2411 = vmatmul.msk.f32.vlgmr.msrb.gmra.mxu3 %vm916_vm5, %v1233_v50 }
 0x3d9   :  { %v1256_v53 = vpop.f32.mrf.mxu0  ;;  %1700 = vmatpush.msrb.mxu3 %v1677_v52  ;;  %v1914_v52 = vld [vmem:[%s3289_s8 + $0x18] sm:$0xff] }
 0x3da   :  { %2412 = vmatmul.msk.f32.vlgmr.msra.gmra.mxu0 %vm916_vm5, %v1256_v53  ;;  %v1676_v53 = vld [vmem:[%s3282_s0 + $0x10] sm:$0xff] }
 0x3db   :  { %1701 = vmatpush.msrb.mxu3 %v1676_v53  ;;  %v1913_v53 = vld [vmem:[%s3289_s8 + $0x10] sm:$0xff] }
 0x3dd   :  { %1702 = vmatpush.msrb.mxu3 %v1675_v54  ;;  %v1912_v54 = vld [vmem:[%s3289_s8 + $0x8] sm:$0xff] }
 0x3e7   :  { %v1302_v55 = vpop.f32.mrf.mxu2 }
 0x3e8   :  { %v1325_v56 = vpop.f32.mrf.mxu3  ;;  %2414 = vmatmul.msk.f32.vlgmr.msra.gmra.mxu2 %vm916_vm5, %v1302_v55  ;;  %v1674_v55 = vld [vmem:[%s3282_s0] sm:$0xff] }
 0x3e9   :  { %2415 = vmatmul.msk.f32.vlgmr.msra.gmra.mxu3 %vm916_vm5, %v1325_v56  ;;  %v1279_v57 = vpop.f32.mrf.mxu1 }
 0x3ea   :  { %v1348_v58 = vpop.f32.mrf.mxu0  ;;  %2413 = vmatmul.msk.f32.vlgmr.msra.gmra.mxu1 %vm916_vm5, %v1279_v57  ;;  %1703 = vmatpush.msrb.mxu3 %v1674_v55  ;;  %v1911_v55 = vld [vmem:[%s3289_s8] sm:$0xff] }
 0x3eb   :  { %2416 = vmatmul.msk.f32.vlgmr.msrb.gmra.mxu0 %vm916_vm5, %v1348_v58  ;;  %2423 = vmatpush.msk.msra.mxu1 %vm1836_vm6, %v1828_v34 }
 0x3ec   :  { %1937 = vmatpush.msra.mxu3 %v1914_v52 }
 0x3ed   :  { %1853 = vmatpush.msra.mxu1 %v1827_v35 }
 0x3ee   :  { %1938 = vmatpush.msra.mxu3 %v1913_v53 }
 0x3ef   :  { %1854 = vmatpush.msra.mxu1 %v1826_v37 }
 0x3f0   :  { %1939 = vmatpush.msra.mxu3 %v1912_v54 }
 0x3f1   :  { %1855 = vmatpush.msra.mxu1 %v1825_v42  ;;  %v2525_v42 = vld [vmem:[%s3288_s3] ss:$0 sm:$0xff] }
 0x3f2   :  { %1940 = vmatpush.msra.mxu3 %v1911_v55 }
 0x3f7   :  { %v1394_v59 = vpop.f32.mrf.mxu2 }
 0x3f8   :  { %2418 = vmatmul.msk.f32.vlgmr.msrb.gmra.mxu2 %vm916_vm5, %v1394_v59 }
 0x3f9   :  { %v1371_v60 = vpop.f32.mrf.mxu1 }
 0x3fa   :  { %2417 = vmatmul.msk.f32.vlgmr.msrb.gmra.mxu1 %vm916_vm5, %v1371_v60 }
 0x457   :  { %v1448_v62 = vpop.f32.mrf.mxu0 }
 0x458   :  { %v1590_v2 = vsel %vm269_vm4, %v1448_v62, 0.0  ;;  %v1720_v62 = vld [vmem:[%s3283_s5 + $0x38] sm:$0xff] }
 0x459   :  { %1740 = vmatpush.msra.mxu0 %v1720_v62 }
 0x45b   :  { %v1425_v61 = vpop.f32.mrf.mxu3 }
 0x45c   :  { %v1589_v0 = vsel %vm269_vm4, %v1425_v61, 0.0  ;;  %v1814_v61 = vld [vmem:[%s2669_s9 + $0x8] sm:$0xff]  ;;  %s3286_s9 = sld [smem:[#allocation10_spill]] }
 0x45d   :  { %v1591_v4 = vadd.f32 %v1590_v2, %v1589_v0  ;;  %v1718_v2 = vld [vmem:[%s3283_s5 + $0x28] sm:$0xff] }
 0x462   :  { %v2524_v34 = vld [vmem:[%s3286_s9] ss:$0 sm:$0xff] }
 0x467   :  { %v1471_v1 = vpop.f32.mrf.mxu1 }
 0x468   :  { %v1592_v3 = vsel %vm269_vm4, %v1471_v1, 0.0  ;;  %v1540_v14 = vpop.f32.mrf.mxu0  ;;  %v1719_v1 = vld [vmem:[%s3283_s5 + $0x30] sm:$0xff] }
 0x469   :  { %v1593_v5 = vadd.f32 %v1592_v3, %v1591_v4  ;;  %v1597_v18 = vsel %vm269_vm4, %v1540_v14, 0.0  ;;  %1741 = vmatpush.msra.mxu0 %v1719_v1  ;;  %v2523_v14 = vld [vmem:[%s3285_s25] ss:$0 sm:$0xff] }
 0x46b   :  { %v1494_v6 = vpop.f32.mrf.mxu2  ;;  %1742 = vmatpush.msra.mxu0 %v1718_v2 }
 0x46c   :  { %v1594_v8 = vsel %vm269_vm4, %v1494_v6, 0.0  ;;  %v1517_v12 = vpop.f32.mrf.mxu3  ;;  %v1717_v6 = vld [vmem:[%s3283_s5 + $0x20] sm:$0xff] }
 0x46d   :  { %v1595_v9 = vadd.f32 %v1594_v8, %v1593_v5  ;;  %v1596_v15 = vsel %vm269_vm4, %v1517_v12, 0.0  ;;  %1743 = vmatpush.msra.mxu0 %v1717_v6  ;;  %v2019_v6 = vld [vmem:[%s3291_s19 + $0x18] sm:$0xff] }
 0x46e   :  { %v1598_v21 = vadd.f32 %v1597_v18, %v1596_v15 }
 0x46f   :  { %v1607_v10 = vadd.f32 %v2521_v7, %v1595_v9  ;;  %v1716_v9 = vld [vmem:[%s3283_s5 + $0x18] sm:$0xff] }
 0x470   :  { %1744 = vmatpush.msra.mxu0 %v1716_v9  ;;  %v1984_v9 = vld [vmem:[%s3290_s14 + $0x8] sm:$0xff] }
 0x471   :  { %v1609_v11 = vadd.f32 %v1607_v10, %v2889_v51 }
 0x472   :  { %1745 = vmatpush.msra.mxu0 %v1715_v29 }
 0x473   :  { %v1613_v13 = vsel %vm269_vm4, %v1609_v11, 0.0 }
 0x474   :  { %1614 = vadd.xlane.f32.xlu2 %v1613_v13 }
 0x477   :  { %v1563_v16 = vpop.f32.mrf.mxu1 }
 0x478   :  { %v1599_v20 = vsel %vm269_vm4, %v1563_v16, 0.0 }
 0x479   :  { %v1600_v22 = vadd.f32 %v1599_v20, %v1598_v21 }
 0x47b   :  { %v1586_v23 = vpop.f32.mrf.mxu2 }
 0x47c   :  { %v1601_v24 = vsel %vm269_vm4, %v1586_v23, 0.0 }
 0x47d   :  { %v1602_v51 = vadd.f32 %v1601_v24, %v1600_v22 }
 0x47f   :  { %v1608_v25 = vadd.f32 %v2521_v7, %v1602_v51 }
 0x481   :  { %v1610_v26 = vadd.f32 %v1608_v25, %v2907_v63  ;;  %v3113_v63 = vsel %vm1624_vm7, %v2568_v30, %v1623_v36  ;;  %v1714_v30 = vld [vmem:[%s3283_s5 + $0x8] sm:$0xff] }
 0x482   :  { %1746 = vmatpush.msra.mxu0 %v1714_v30 }
 0x483   :  { %v1616_v27 = vsel %vm269_vm4, %v1610_v26, 0.0 }
 0x484   :  { %1617 = vadd.xlane.f32.xlu0 %v1616_v27  ;;  %1747 = vmatpush.msra.mxu0 %v1713_v31 }
 0x486   :  { %2032 = vmatpush.msrb.mxu0 %v2019_v6 }
 0x498   :  { %1816 = vperm.xlu0 %2487, %v1813_v28  }
 0x4e7   :  { %v1615_v38 = vpop.xlane.xlu2 %1614 }
 0x4e8   :  { %v1626_v39 = vmul.f32 %v3113_v63, %v1615_v38 }
 0x4ea   :  { %v1628_v40 = vsub.f32 %v1609_v11, %v1626_v39  ;;  %v2522_v11 = vld [vmem:[%s3284_s13] ss:$0 sm:$0xff] }
 0x4ec   :  { %v1630_v41 = vmul.f32 %v1628_v40, %v1628_v40 }
 0x4ee   :  { %v1632_v43 = vsel %vm269_vm4, %v1630_v41, 0.0  ;;  %v1863_v41 = vld [vmem:[%s3287_s29] sm:$0xff] }
 0x4ef   :  { %1633 = vadd.xlane.f32.xlu1 %v1632_v43 }
 0x4f7   :  { %v1618_v44 = vpop.xlane.xlu0 %1617 }
 0x4f8   :  { %v1627_v45 = vmul.f32 %v3113_v63, %v1618_v44 }
 0x4fa   :  { %v3119_v46 = vsub.f32 %v1610_v26, %v1627_v45 }
 0x4fc   :  { %v1631_v47 = vmul.f32 %v3119_v46, %v3119_v46 }
 0x4fe   :  { %v1635_v48 = vsel %vm269_vm4, %v1631_v47, 0.0 }
 0x4ff   :  { %1636 = vadd.xlane.f32.xlu2 %v1635_v48 }
 0x508   :  { %1819 = vperm.xlu1 %2488, %v1814_v61  }
 0x50a   :  { %v1817_v49 = vpop.permute.xlu0 %1816 }
 0x50b   :  { %vm1821_vm9 = vcmp.eq.s32.totalorder %v2856_v17, %v1817_v49 }
 0x50c   :  { %v1823_v50 = vsel %vm1821_vm9, 1.0, %v2651_v19 }
 0x50d   :  { %2424 = vmatmul.msk.f32.vlgmr.msra.gmra.mxu1 %vm1829_vm8, %v1823_v50 }
 0x562   :  { %v1634_v56 = vpop.xlane.xlu1 %1633 }
 0x563   :  { %v1638_v57 = vmul.f32 %v1634_v56, %v3113_v63 }
 0x565   :  { %v1640_v58 = vadd.f32 1e-05, %v1638_v57 }
 0x567   :  { %2569 = vrsqrt.f32 %v1640_v58  ;;  %vm1648_vm11 = vweird.f32 %v1640_v58 }
 0x56d   :  { %v2570_v59 = vpop.eup %2569 }
 0x56e   :  { %v1643_v60 = vmul.f32 %v2570_v59, %v1640_v58  ;;  %vm1649_vm10 = vweird.f32 %v2570_v59 }
 0x56f   :  { %vm1650_vm12 = vmor %vm1648_vm11, %vm1649_vm10 }
 0x570   :  { %v1644_v0 = vmul.f32 %v2570_v59, %v1643_v60 }
 0x572   :  { %v1645_v3 = vmul.f32 0.5, %v1644_v0  ;;  %v1637_v4 = vpop.xlane.xlu2 %1636 }
 0x573   :  { %v1639_v5 = vmul.f32 %v1637_v4, %v3113_v63 }
 0x574   :  { %v1646_v7 = vsub.f32 1.5, %v1645_v3 }
 0x575   :  { %v1641_v8 = vadd.f32 1e-05, %v1639_v5  ;;  %v1986_v5 = vld [vmem:[%s3290_s14 + $0x18] sm:$0xff] }
 0x576   :  { %v1647_v10 = vmul.f32 %v2570_v59, %v1646_v7  ;;  %v1985_v7 = vld [vmem:[%s3290_s14 + $0x10] sm:$0xff] }
 0x577   :  { %2571 = vrsqrt.f32 %v1641_v8  ;;  %vm1658_vm14 = vweird.f32 %v1641_v8 }
 0x578   :  { %v1651_v12 = vsel %vm1650_vm12, %v2570_v59, %v1647_v10  ;;  %v2017_v10 = vld [vmem:[%s3291_s19 + $0x8] sm:$0xff] }
 0x579   :  { %v1662_v13 = vmul.f32 %v1651_v12, %v1628_v40  ;;  %v2016_v12 = vld [vmem:[%s3291_s19] sm:$0xff] }
 0x57a   :  { %v1820_v32 = vpop.permute.xlu1 %1819 }
 0x57b   :  { %v1667_v15 = vmul.f32 %v2522_v11, %v1662_v13  ;;  %vm1822_vm0 = vcmp.eq.s32.totalorder %v2856_v17, %v1820_v32 }
 0x57c   :  { %v1824_v33 = vsel %vm1822_vm0, 1.0, %v2651_v19  ;;  %v1864_v19 = vld [vmem:[%s3287_s29 + $0x8] sm:$0xff] }
 0x57d   :  { %v2572_v16 = vpop.eup %2571  ;;  %v1672_v18 = vadd.f32 %v2523_v14, %v1667_v15  ;;  %2425 = vmatmul.msk.f32.gmra.mxu1 %vm1829_vm8, %v1824_v33 }
 0x57e   :  { %v1653_v20 = vmul.f32 %v2572_v16, %v1641_v8  ;;  %vm1659_vm13 = vweird.f32 %v2572_v16  ;;  %v2018_v8 = vld [vmem:[%s3291_s19 + $0x10] sm:$0xff] }
 0x57f   :  { %2419 = vmatmul.msk.f32.vlgmr.msrb.gmra.mxu3 %vm269_vm4, %v1672_v18  ;;  %vm1660_vm15 = vmor %vm1658_vm14, %vm1659_vm13  ;;  %2033 = vmatpush.msrb.mxu0 %v2018_v8 }
 0x580   :  { %v1654_v21 = vmul.f32 %v2572_v16, %v1653_v20 }
 0x581   :  { %2034 = vmatpush.msrb.mxu0 %v2017_v10 }
 0x582   :  { %v1655_v22 = vmul.f32 0.5, %v1654_v21 }
 0x583   :  { %2035 = vmatpush.msrb.mxu0 %v2016_v12 }
 0x584   :  { %v1656_v23 = vsub.f32 1.5, %v1655_v22 }
 0x586   :  { %v1657_v24 = vmul.f32 %v2572_v16, %v1656_v23  ;;  %v1951_v23 = vld [vmem:[%s3292_s24 + $0x8] sm:$0xff] }
 0x588   :  { %v1661_v51 = vsel %vm1660_vm15, %v2572_v16, %v1657_v24  ;;  %v2528_v16 = vld [vmem:[%s3293_s30] ss:$0 sm:$0xff] }
 0x589   :  { %v1663_v25 = vmul.f32 %v1661_v51, %v3119_v46  ;;  %v1950_v51 = vld [vmem:[%s3292_s24] sm:$0xff] }
 0x58a   :  { %v1857_v26 = vpop.f32.mrf.mxu1 }
 0x58b   :  { %1883 = vmatpush.msra.mxu2 %v1857_v26  ;;  %v1668_v27 = vmul.f32 %v2522_v11, %v1663_v25  ;;  %v1983_v11 = vld [vmem:[%s3290_s14] sm:$0xff] }
 0x58c   :  { %2426 = vmatmul.msk.f32.vlgmr.msra.gmra.mxu2 %vm916_vm5, %v1863_v41 }
 0x58d   :  { %v1673_v28 = vadd.f32 %v2523_v14, %v1668_v27  ;;  %v1953_v14 = vld [vmem:[%s3292_s24 + $0x18] sm:$0xff] }
 0x58e   :  { %1972 = vmatpush.msrb.mxu1 %v1953_v14  ;;  %v2173_v14 = vld [vmem:[%s3297_s22 + $0x10] sm:$0xff] }
 0x58f   :  { %2420 = vmatmul.msk.f32.gmra.mxu3 %vm269_vm4, %v1673_v28 }
 0x5fa   :  { %v1860_v17 = vpop.f32.mrf.mxu1 }
 0x5fb   :  { %1906 = vmatpush.msrb.mxu2 %v1860_v17 }
 0x5fc   :  { %2427 = vmatmul.msk.f32.vlgmr.msrb.gmra.mxu2 %vm916_vm5, %v1864_v19 }
 0x5fd   :  { %2005 = vmatpush.msra.mxu2 %v1986_v5 }
 0x5ff   :  { %2006 = vmatpush.msra.mxu2 %v1985_v7 }
 0x601   :  { %2007 = vmatpush.msra.mxu2 %v1984_v9 }
 0x602   :  { %v1705_v35 = vpop.f32.mrf.mxu3 }
 0x603   :  { %v1706_v36 = vadd.f32 %v2524_v34, %v1705_v35  ;;  %2008 = vmatpush.msra.mxu2 %v1983_v11 }
 0x605   :  { %v1711_v37 = vmax.f32 %v1706_v36, 0.0 }
 0x607   :  { %2421 = vmatmul.msk.f32.vlgmr.msra.gmra.mxu0 %vm1725_vm1, %v1711_v37  ;;  %v2526_v37 = vld [vmem:[%s3294_s6] ss:$0 sm:$0xff] }
 0x60f   :  { %v1885_v56 = vpop.f32.mrf.mxu2 }
 0x610   :  { %2428 = vmatmul.msk.f32.vlgmr.msra.gmra.mxu3 %vm269_vm4, %v1885_v56 }
 0x612   :  { %v1708_v38 = vpop.f32.mrf.mxu3 }
 0x613   :  { %v1709_v39 = vadd.f32 %v2524_v34, %v1708_v38 }
 0x615   :  { %v1712_v40 = vmax.f32 %v1709_v39, 0.0 }
 0x617   :  { %2422 = vmatmul.msk.f32.gmra.mxu0 %vm1725_vm1, %v1712_v40  ;;  %v2527_v40 = vld [vmem:[%s3295_s12] ss:$0 sm:$0xff] }
 0x67f   :  { %v1908_v59 = vpop.f32.mrf.mxu2 }
 0x680   :  { %2429 = vmatmul.msk.f32.gmra.mxu3 %vm269_vm4, %v1908_v59 }
 0x684   :  { %v1749_v43 = vpop.f32.mrf.mxu0 }
 0x685   :  { %v1750_v44 = vadd.f32 %v2525_v42, %v1749_v43 }
 0x687   :  { %v1755_v45 = vadd.f32 %v1750_v44, %v1672_v18  ;;  %v1952_v18 = vld [vmem:[%s3292_s24 + $0x10] sm:$0xff] }
 0x688   :  { %1973 = vmatpush.msrb.mxu1 %v1952_v18 }
 0x689   :  { %v1759_v46 = vsel %vm269_vm4, %v1755_v45, 0.0 }
 0x68a   :  { %1760 = vadd.xlane.f32.xlu2 %v1759_v46  ;;  %1974 = vmatpush.msrb.mxu1 %v1951_v23 }
 0x68c   :  { %1975 = vmatpush.msrb.mxu1 %v1950_v51 }
 0x693   :  { %v1942_v21 = vpop.f32.mrf.mxu3 }
 0x694   :  { %v1752_v47 = vpop.f32.mrf.mxu0  ;;  %v3188_v22 = vadd.f32 %v2528_v16, %v1942_v21 }
 0x695   :  { %v1753_v48 = vadd.f32 %v2525_v42, %v1752_v47 }
 0x696   :  { %v1948_v24 = vmax.f32 %v3188_v22, 0.0 }
 0x697   :  { %v1756_v49 = vadd.f32 %v1753_v48, %v1673_v28 }
 0x698   :  { %2430 = vmatmul.msk.f32.vlgmr.msrb.gmra.mxu1 %vm269_vm4, %v1948_v24 }
 0x699   :  { %v1762_v50 = vsel %vm269_vm4, %v1756_v49, 0.0 }
 0x69a   :  { %1763 = vadd.xlane.f32.xlu2 %v1762_v50 }
 0x6fd   :  { %v1761_v57 = vpop.xlane.xlu2 %1760 }
 0x6fe   :  { %v1765_v58 = vmul.f32 %v1761_v57, %v3113_v63 }
 0x700   :  { %v3164_v60 = vsub.f32 %v1755_v45, %v1765_v58  ;;  %v2529_v58 = vld [vmem:[%s3296_s20] ss:$0 sm:$0xff] }
 0x702   :  { %v1769_v61 = vmul.f32 %v3164_v60, %v3164_v60 }
 0x703   :  { %v1945_v27 = vpop.f32.mrf.mxu3 }
 0x704   :  { %v1771_v62 = vsel %vm269_vm4, %v1769_v61, 0.0  ;;  %v3196_v29 = vadd.f32 %v2528_v16, %v1945_v27 }
 0x705   :  { %1772 = vadd.xlane.f32.xlu0 %v1771_v62  ;;  %v2530_v62 = vld [vmem:[%s3296_s20 + $0x1] ss:$0 sm:$0xff] }
 0x706   :  { %v1949_v32 = vmax.f32 %v3196_v29, 0.0 }
 0x708   :  { %2431 = vmatmul.msk.f32.gmra.mxu1 %vm269_vm4, %v1949_v32 }
 0x70d   :  { %v1764_v0 = vpop.xlane.xlu2 %1763 }
 0x70e   :  { %v1766_v1 = vmul.f32 %v1764_v0, %v3113_v63 }
 0x710   :  { %v3171_v2 = vsub.f32 %v1756_v49, %v1766_v1 }
 0x712   :  { %v1770_v3 = vmul.f32 %v3171_v2, %v3171_v2 }
 0x714   :  { %v1774_v4 = vsel %vm269_vm4, %v1770_v3, 0.0 }
 0x715   :  { %1775 = vadd.xlane.f32.xlu2 %v1774_v4  ;;  %v1977_v54 = vpop.f32.mrf.mxu1 }
 0x778   :  { %v1773_v13 = vpop.xlane.xlu0 %1772 }
 0x779   :  { %v1777_v15 = vmul.f32 %v1773_v13, %v3113_v63  ;;  %v2174_v13 = vld [vmem:[%s3297_s22 + $0x18] sm:$0xff] }
 0x77a   :  { %2193 = vmatpush.msra.mxu0 %v2174_v13 }
 0x77b   :  { %v1779_v20 = vadd.f32 1e-05, %v1777_v15  ;;  %v2172_v15 = vld [vmem:[%s3297_s22 + $0x8] sm:$0xff] }
 0x77c   :  { %2194 = vmatpush.msra.mxu0 %v2173_v14 }
 0x77d   :  { %2573 = vrsqrt.f32 %v1779_v20  ;;  %vm1787_vm3 = vweird.f32 %v1779_v20 }
 0x77e   :  { %2195 = vmatpush.msra.mxu0 %v2172_v15 }
 0x783   :  { %v2574_v25 = vpop.eup %2573 }
 0x784   :  { %v1782_v26 = vmul.f32 %v2574_v25, %v1779_v20  ;;  %vm1788_vm2 = vweird.f32 %v2574_v25 }
 0x785   :  { %vm1789_vm6 = vmor %vm1787_vm3, %vm1788_vm2  ;;  %v1980_v57 = vpop.f32.mrf.mxu1 }
 0x786   :  { %v1783_v28 = vmul.f32 %v2574_v25, %v1782_v26 }
 0x788   :  { %v1784_v30 = vmul.f32 0.5, %v1783_v28  ;;  %v1776_v31 = vpop.xlane.xlu2 %1775  ;;  %v2531_v28 = vld [vmem:[%s3298_s23] ss:$0 sm:$0xff] }
 0x789   :  { %v1778_v33 = vmul.f32 %v1776_v31, %v3113_v63 }
 0x78a   :  { %v1785_v34 = vsub.f32 1.5, %v1784_v30 }
 0x78b   :  { %v1780_v35 = vadd.f32 1e-05, %v1778_v33 }
 0x78c   :  { %v1786_v36 = vmul.f32 %v2574_v25, %v1785_v34 }
 0x78d   :  { %2575 = vrsqrt.f32 %v1780_v35  ;;  %vm1797_vm8 = vweird.f32 %v1780_v35 }
 0x78e   :  { %v1790_v38 = vsel %vm1789_vm6, %v2574_v25, %v1786_v36  ;;  %v2171_v25 = vld [vmem:[%s3297_s22] sm:$0xff] }
 0x78f   :  { %v1801_v39 = vmul.f32 %v1790_v38, %v3164_v60  ;;  %2196 = vmatpush.msra.mxu0 %v2171_v25 }
 0x791   :  { %v1806_v41 = vmul.f32 %v2526_v37, %v1801_v39 }
 0x793   :  { %v2576_v17 = vpop.eup %2575  ;;  %v1811_v19 = vadd.f32 %v2527_v40, %v1806_v41 }
 0x794   :  { %v1792_v42 = vmul.f32 %v2576_v17, %v1780_v35  ;;  %vm1798_vm7 = vweird.f32 %v2576_v17 }
 0x795   :  { %2432 = vmatmul.msk.f32.vlgmr.msra.gmra.mxu2 %vm269_vm4, %v1811_v19  ;;  %2434 = vmatmul.msk.f32.vlgmr.msrb.gmra.mxu0 %vm269_vm4, %v1811_v19  ;;  %vm1799_vm9 = vmor %vm1797_vm8, %vm1798_vm7 }
 0x796   :  { %v1793_v43 = vmul.f32 %v2576_v17, %v1792_v42 }
 0x798   :  { %v1794_v44 = vmul.f32 0.5, %v1793_v43  ;;  %v2271_v43 = vld [vmem:[%s2829_s4 + $0x18] sm:$0xff] }
 0x79a   :  { %v1795_v45 = vsub.f32 1.5, %v1794_v44  ;;  %v2270_v44 = vld [vmem:[%s2829_s4 + $0x10] sm:$0xff] }
 0x79c   :  { %v1796_v46 = vmul.f32 %v2576_v17, %v1795_v45  ;;  %v2269_v45 = vld [vmem:[%s2829_s4 + $0x8] sm:$0xff] }
 0x79e   :  { %v1800_v47 = vsel %vm1799_vm9, %v2576_v17, %v1796_v46  ;;  %v2268_v46 = vld [vmem:[%s2829_s4] sm:$0xff] }
 0x79f   :  { %v1802_v48 = vmul.f32 %v1800_v47, %v3171_v2 }
 0x7a1   :  { %v1807_v49 = vmul.f32 %v2526_v37, %v1802_v48 }
 0x7a3   :  { %v1812_v50 = vadd.f32 %v2527_v40, %v1807_v49 }
 0x7a5   :  { %2433 = vmatmul.msk.f32.gmra.mxu2 %vm269_vm4, %v1812_v50  ;;  %2435 = vmatmul.msk.f32.gmra.mxu0 %vm269_vm4, %v1812_v50 }
 0x812   :  { %v2037_v52 = vpop.f32.mrf.mxu0 }
 0x813   :  { %2143 = vmatpush.msrb.mxu2 %v2037_v52 }
 0x818   :  { %v2010_v53 = vpop.f32.mrf.mxu2 }
 0x819   :  { %2436 = vmatpush.xpose.msk.msrb.mxu3 %vm269_vm4, %v2010_v53 }
 0x81c   :  { %2437 = vmatmul.msk.f32.vlgmr.msrb.gmra.mxu3 %vm269_vm4, %v1977_v54 }
 0x822   :  { %v2040_v55 = vpop.f32.mrf.mxu0 }
 0x823   :  { %2166 = vmatpush.msra.mxu3 %v2040_v55 }
 0x828   :  { %v2013_v56 = vpop.f32.mrf.mxu2 }
 0x829   :  { %2438 = vmatpush.xpose.msk.msra.mxu1 %vm269_vm4, %v2013_v56 }
 0x82c   :  { %2439 = vmatmul.msk.f32.vlgmr.msra.gmra.mxu1 %vm269_vm4, %v1980_v57 }
 0x82d   :  { %2294 = vmatpush.msrb.mxu1 %v2271_v43 }
 0x82f   :  { %2295 = vmatpush.msrb.mxu1 %v2270_v44 }
 0x831   :  { %2296 = vmatpush.msrb.mxu1 %v2269_v45 }
 0x833   :  { %2297 = vmatpush.msrb.mxu1 %v2268_v46 }
 0x89f   :  { %v2074_v59 = vpop.f32.mrf.mxu3 }
 0x8a0   :  { %v2075_v60 = vadd.f32 %v2529_v58, %v2074_v59 }
 0x8a2   :  { %v2103_v61 = vsel %vm916_vm5, %v2075_v60, -inf }
 0x8a3   :  { %2104 = vmax.xlane.f32.xlu2 %v2103_v61  ;;  %v2532_v61 = vld [vmem:[%s3299_s26] ss:$0 sm:$0xff] }
 0x8a9   :  { %v2100_v0 = vpop.f32.mrf.mxu1 }
 0x8aa   :  { %v2101_v1 = vadd.f32 %v2530_v62, %v2100_v0 }
 0x8ac   :  { %v2106_v2 = vsel %vm916_vm5, %v2101_v1, -inf }
 0x8ad   :  { %2107 = vmax.xlane.f32.xlu1 %v2106_v2  ;;  %v2533_v2 = vld [vmem:[%s2824_s27] ss:$0 sm:$0xff]  ;;  %s2653_s27 = smov [#allocation2]  }
 0x8ae   :  { %s2311_s4 = sshll.u32 %s2653_s27, 4  ;;  %s2312_s4 = int_to_ptr.vmem [resolvable:$true] %s2311_s4 }
 0x916   :  { %v2105_v3 = vpop.xlane.xlu2 %2104 }
 0x917   :  { %v2109_v4 = vsub.f32 %v2075_v60, %v2105_v3 }
 0x919   :  { %v2111_v5 = vmul.f32 1.442695, %v2109_v4 }
 0x91b   :  { %2577 = vpow2.f32 %v2111_v5 }
 0x920   :  { %v2108_v6 = vpop.xlane.xlu1 %2107 }
 0x921   :  { %v2578_v7 = vpop.eup %2577  ;;  %v2110_v8 = vsub.f32 %v2101_v1, %v2108_v6 }
 0x922   :  { %v2115_v9 = vsel %vm916_vm5, %v2578_v7, 0.0 }
 0x923   :  { %v2113_v10 = vmul.f32 1.442695, %v2110_v8  ;;  %2116 = vadd.xlane.f32.xlu2 %v2115_v9 }
 0x925   :  { %2579 = vpow2.f32 %v2113_v10 }
 0x92b   :  { %v2580_v11 = vpop.eup %2579 }
 0x92c   :  { %v2118_v12 = vsel %vm916_vm5, %v2580_v11, 0.0 }
 0x92d   :  { %2119 = vadd.xlane.f32.xlu2 %v2118_v12  ;;  %v2534_v12 = vld [vmem:[%s2834_s17] ss:$0 sm:$0xff] }
 0x996   :  { %v2117_v16 = vpop.xlane.xlu2 %2116 }
 0x997   :  { %2581 = vrcp.f32 %v2117_v16 }
 0x99d   :  { %v2582_v18 = vpop.eup %2581 }
 0x99e   :  { %v2123_v20 = vmul.f32 %v2582_v18, %v2578_v7 }
 0x9a0   :  { %2440 = vmatmul.msk.f32.vlgmr.msrb.gmra.mxu2 %vm916_vm5, %v2123_v20  ;;  %v2120_v21 = vpop.xlane.xlu2 %2119 }
 0x9a1   :  { %2583 = vrcp.f32 %v2120_v21 }
 0x9a7   :  { %v2584_v23 = vpop.eup %2583 }
 0x9a8   :  { %v2124_v51 = vmul.f32 %v2584_v23, %v2580_v11 }
 0x9aa   :  { %2441 = vmatmul.msk.f32.vlgmr.msra.gmra.mxu3 %vm916_vm5, %v2124_v51 }
 0xa23   :  { %v2145_v26 = vpop.f32.mrf.mxu2 }
 0xa24   :  { %2442 = vmatmul.msk.f32.vlgmr.msra.gmra.mxu0 %vm269_vm4, %v2145_v26 }
 0xa2d   :  { %v2168_v27 = vpop.f32.mrf.mxu3 }
 0xa2e   :  { %2443 = vmatmul.msk.f32.gmra.mxu0 %vm269_vm4, %v2168_v27 }
 0xaa1   :  { %v2198_v30 = vpop.f32.mrf.mxu0 }
 0xaa2   :  { %v2204_v31 = vadd.f32 %v2198_v30, %v1948_v24 }
 0xaa4   :  { %v2210_v33 = vadd.f32 %v2531_v28, %v2204_v31 }
 0xaa6   :  { %v2214_v34 = vsel %vm269_vm4, %v2210_v33, 0.0 }
 0xaa7   :  { %2215 = vadd.xlane.f32.xlu2 %v2214_v34 }
 0xaab   :  { %v2201_v35 = vpop.f32.mrf.mxu0 }
 0xaac   :  { %v2205_v36 = vadd.f32 %v2201_v35, %v1949_v32 }
 0xaae   :  { %v2211_v37 = vadd.f32 %v2531_v28, %v2205_v36 }
 0xab0   :  { %v2217_v38 = vsel %vm269_vm4, %v2211_v37, 0.0 }
 0xab1   :  { %2218 = vadd.xlane.f32.xlu0 %v2217_v38 }
 0xb1a   :  { %v2216_v39 = vpop.xlane.xlu2 %2215 }
 0xb1b   :  { %v2220_v40 = vmul.f32 %v2216_v39, %v3113_v63 }
 0xb1d   :  { %v2222_v22 = vsub.f32 %v2210_v33, %v2220_v40 }
 0xb1f   :  { %v2224_v24 = vmul.f32 %v2222_v22, %v2222_v22 }
 0xb21   :  { %v2226_v41 = vsel %vm269_vm4, %v2224_v24, 0.0 }
 0xb22   :  { %2227 = vadd.xlane.f32.xlu2 %v2226_v41 }
 0xb24   :  { %v2219_v17 = vpop.xlane.xlu0 %2218 }
 0xb25   :  { %v2221_v29 = vmul.f32 %v2219_v17, %v3113_v63 }
 0xb27   :  { %v2223_v32 = vsub.f32 %v2211_v37, %v2221_v29 }
 0xb29   :  { %v2225_v19 = vmul.f32 %v2223_v32, %v2223_v32 }
 0xb2b   :  { %v2229_v42 = vsel %vm269_vm4, %v2225_v19, 0.0 }
 0xb2c   :  { %2230 = vadd.xlane.f32.xlu0 %v2229_v42 }
 0xb95   :  { %v2228_v47 = vpop.xlane.xlu2 %2227 }
 0xb96   :  { %v2232_v48 = vmul.f32 %v2228_v47, %v3113_v63 }
 0xb98   :  { %v2234_v49 = vadd.f32 1e-05, %v2232_v48 }
 0xb9a   :  { %2585 = vrsqrt.f32 %v2234_v49  ;;  %vm2242_vm10 = vweird.f32 %v2234_v49 }
 0xb9f   :  { %v2231_v50 = vpop.xlane.xlu0 %2230 }
 0xba0   :  { %v2586_v52 = vpop.eup %2585  ;;  %v2233_v53 = vmul.f32 %v2231_v50, %v3113_v63 }
 0xba1   :  { %v2237_v54 = vmul.f32 %v2586_v52, %v2234_v49  ;;  %vm2243_vm5 = vweird.f32 %v2586_v52 }
 0xba2   :  { %v2235_v55 = vadd.f32 1e-05, %v2233_v53  ;;  %vm2244_vm11 = vmor %vm2242_vm10, %vm2243_vm5 }
 0xba3   :  { %v2238_v56 = vmul.f32 %v2586_v52, %v2237_v54 }
 0xba4   :  { %2587 = vrsqrt.f32 %v2235_v55  ;;  %vm2252_vm13 = vweird.f32 %v2235_v55 }
 0xba5   :  { %v2239_v57 = vmul.f32 0.5, %v2238_v56 }
 0xba7   :  { %v2240_v58 = vsub.f32 1.5, %v2239_v57 }
 0xba9   :  { %v2241_v59 = vmul.f32 %v2586_v52, %v2240_v58 }
 0xbaa   :  { %v2588_v60 = vpop.eup %2587 }
 0xbab   :  { %v2245_v62 = vsel %vm2244_vm11, %v2586_v52, %v2241_v59  ;;  %v2247_v0 = vmul.f32 %v2588_v60, %v2235_v55  ;;  %vm2253_vm12 = vweird.f32 %v2588_v60 }
 0xbac   :  { %v2256_v1 = vmul.f32 %v2245_v62, %v2222_v22  ;;  %vm2254_vm14 = vmor %vm2252_vm13, %vm2253_vm12 }
 0xbad   :  { %v2248_v3 = vmul.f32 %v2588_v60, %v2247_v0 }
 0xbae   :  { %v2261_v63 = vmul.f32 %v2532_v61, %v2256_v1 }
 0xbaf   :  { %v2249_v4 = vmul.f32 0.5, %v2248_v3 }
 0xbb0   :  { %v2266_v5 = vadd.f32 %v2533_v2, %v2261_v63 }
 0xbb1   :  { %v2250_v6 = vsub.f32 1.5, %v2249_v4 }
 0xbb2   :  { %2444 = vmatmul.msk.f32.vlgmr.msrb.gmra.mxu1 %vm269_vm4, %v2266_v5 }
 0xbb3   :  { %v2251_v7 = vmul.f32 %v2588_v60, %v2250_v6 }
 0xbb5   :  { %v2255_v8 = vsel %vm2254_vm14, %v2588_v60, %v2251_v7 }
 0xbb6   :  { %v2257_v9 = vmul.f32 %v2255_v8, %v2223_v32 }
 0xbb8   :  { %v2262_v10 = vmul.f32 %v2532_v61, %v2257_v9 }
 0xbba   :  { %v2267_v11 = vadd.f32 %v2533_v2, %v2262_v10 }
 0xbbc   :  { %2445 = vmatmul.msk.f32.gmra.mxu1 %vm269_vm4, %v2267_v11 }
 0xc2f   :  { %v2299_v13 = vpop.f32.mrf.mxu1 }
 0xc30   :  { %v2300_v14 = vadd.f32 %v2534_v12, %v2299_v13 }
 0xc32   :  { %2305 = vst [vmem:[#allocation2] sm:$0xff] %v2300_v14 }
 0xc39   :  { %v2302_v15 = vpop.f32.mrf.mxu1 }
 0xc3a   :  { %v2303_v16 = vadd.f32 %v2534_v12, %v2302_v15 }
 0xc3c   :  { %2306 = vst [vmem:[#allocation2 + $0x8] sm:$0xff] %v2303_v16 }
 0xc3d   :  { %2612 = shalt.err (!%p2609_p4)
}
 0xc3e   :  { %s2654_s17 = smov 128   ;;  %s2655_s10 = smov 8  }
 0xc3f   :  { %2319 = dma.vmem_to_hbm [thread:$0]  %s2312_s4, 256, %s2314_s28, [#allocation3], %s2654_s17, %s2654_s17, %s2655_s10  }
 0xc40   :  { %2613 = dma.done.wait [#allocation3], 256  }
 0xc41   :  { %2614 = vsyncadd [#allocation3], 4294967040 }
 0xc42   :  { %2324 = vsyncpa [#allocation3], 1 }

</bundles_post_ra>
